<compile_context>
chip_gen: v5e
topology: v5e:2x2
jax: 0.10.0
libtpu: 0.0.40
codegen_flags: <defaults>
</compile_context>

<pallas_src>
import functools

import jax
import jax.numpy as jnp
from jax.experimental import pallas as pl
from jax.experimental.pallas import tpu as pltpu

LANE = 128


def _round_up(x, m):
    return (x + m - 1) // m * m


def _default_elementwise_dtype():
    """bf16 elementwise math on chips with a bf16 VPU (v6e/v7x); f32 otherwise (v5e-)."""
    try:
        kind = jax.devices()[0].device_kind.lower()
    except Exception:
        kind = ""
    if any(v in kind for v in ("v2", "v3", "v4", "v5")):
        return jnp.float32
    return jnp.bfloat16


def prepare_value_params(w1, b1, w2, b2, wv, bv, elementwise_dtype=None):
    """One-time, outside-jit conversion of ValueNetwork params into kernel form.

    w1: [D, H1], b1: [H1]/[1, H1], w2: [H1, H2], b2: [H2]/[1, H2],
    wv: [H2, 1], bv: [1]/[1, 1].
    Hoisting the casts here means the jitted forward launches only the pallas_call.
    """
    ew = elementwise_dtype if elementwise_dtype is not None else _default_elementwise_dtype()
    return (
        jnp.asarray(w1, jnp.float32),                  # layer-1 stays f32 (K is tiny)
        jnp.asarray(b1, ew).reshape(1, -1),
        jnp.asarray(w2, jnp.bfloat16),                 # layer-2 bf16 MXU operand
        jnp.asarray(b2, ew).reshape(1, -1),
        jnp.asarray(wv, ew).reshape(1, -1),            # value head as a [1, H2] row
        jnp.asarray(bv, jnp.float32).reshape(1, 1),    # scalar bias -> SMEM
    )


def _value_net_kernel(x_ref, w1_ref, b1_ref, w2_ref, b2_ref, wv_ref, bv_ref, o_ref):
    # hidden_layer_1 + ReLU: f32 MXU matmul (K = input_dims, tiny); bias/ReLU run in
    # the dtype the biases were prepared in (bf16 on v6e/v7x, f32 on v5e).
    h1 = jnp.dot(x_ref[...], w1_ref[...], preferred_element_type=jnp.float32)
    h1 = jnp.maximum(h1.astype(b1_ref.dtype) + b1_ref[...], 0).astype(jnp.bfloat16)
    # hidden_layer_2 + ReLU: bf16 MXU operands, f32 accumulation.
    h2 = jnp.dot(h1, w2_ref[...], preferred_element_type=jnp.float32)
    h2 = jnp.maximum(h2.astype(b2_ref.dtype) + b2_ref[...], 0)
    # v head (out_features = 1): VPU multiply + lane (XLU) reduce, f32 accumulation.
    prod = (h2 * wv_ref[...]).astype(jnp.float32)
    v = jnp.sum(prod, axis=-1) + bv_ref[0, 0]          # (tm,)
    o_ref[...] = v[None, :].astype(o_ref.dtype)        # lane-dense (1, tm) store


def _choose_tile(B, block_m, min_steps):
    if B <= LANE:
        return B                                       # single exact block (block == array dims)
    tm = _round_up(pl.cdiv(B, min_steps), LANE)        # aim for >= min_steps grid steps
    return max(LANE, min(tm, _round_up(block_m, LANE)))


@functools.partial(jax.jit, static_argnames=("block_m", "min_steps"))
def value_network_forward(state, w1, b1, w2, b2, wv, bv, *, block_m=2048, min_steps=8):
    """state: [B, D] f32; params from prepare_value_params()  ->  v: [B, 1] f32."""
    B, D = state.shape
    H1 = w1.shape[1]
    H2 = w2.shape[1]
    assert w1.shape[0] == D and w2.shape[0] == H1 and wv.shape == (1, H2)
    assert H1 % LANE == 0 and H2 % LANE == 0, "hidden dims must be multiples of 128"

    tm = _choose_tile(B, block_m, min_steps)
    grid = (pl.cdiv(B, tm),)

    flops = 2 * B * (D * H1 + H1 * H2 + H2)
    bytes_accessed = (
        B * D * 4                                      # state (unpadded)
        + D * H1 * 4 + H1 * H2 * 2                     # weights (w1 f32, w2 bf16)
        + (H1 + 2 * H2) * b1.dtype.itemsize + 4        # biases + value row + bv
        + B * 4                                        # output
    )

    out = pl.pallas_call(
        _value_net_kernel,
        out_shape=jax.ShapeDtypeStruct((1, B), jnp.float32),
        grid=grid,
        in_specs=[
            pl.BlockSpec((tm, D), lambda i: (i, 0)),   # state: pipelined over batch
            pl.BlockSpec((D, H1), lambda i: (0, 0)),   # weights/biases: VMEM-resident
            pl.BlockSpec((1, H1), lambda i: (0, 0)),
            pl.BlockSpec((H1, H2), lambda i: (0, 0)),
            pl.BlockSpec((1, H2), lambda i: (0, 0)),
            pl.BlockSpec((1, H2), lambda i: (0, 0)),   # value-head row
            pl.BlockSpec(memory_space=pltpu.MemorySpace.SMEM),   # bv scalar in SMEM
        ],
        out_specs=pl.BlockSpec((1, tm), lambda i: (0, i)),       # lane-dense output row
        compiler_params=pltpu.CompilerParams(
            dimension_semantics=("parallel",),         # megacore sharding on v7x
            vmem_limit_bytes=32 << 20,                 # not binding; safe on v7x 64 MiB VMEM
        ),
        cost_estimate=pl.CostEstimate(
            flops=flops, transcendentals=0, bytes_accessed=bytes_accessed),
    )(state, w1, b1, w2, b2, wv, bv)

    return out.reshape(B, 1)


def init_linear(key, fan_in, fan_out):
    """PyTorch nn.Linear default init: U(-1/sqrt(fan_in), 1/sqrt(fan_in)).
    Returns W as [fan_in, fan_out] (transposed vs torch's [out, in]) and b as [1, fan_out]."""
    kw, kb = jax.random.split(key)
    bound = 1.0 / jnp.sqrt(jnp.float32(fan_in))
    w = jax.random.uniform(kw, (fan_in, fan_out), jnp.float32, -bound, bound)
    b = jax.random.uniform(kb, (1, fan_out), jnp.float32, -bound, bound)
    return w, b


# TODO(synk): the Adam optimizer, checkpoint save/load and device placement from the
# PyTorch module are host-side concerns with no Pallas equivalent; only forward() is implemented.

if __name__ == "__main__":
    # Small shapes consistent with the module defaults (hidden dims 256, flat state).
    batch = 250          # not a multiple of the tile -> exercises the masked partial block
    input_dims = 8       # *self.input_dims (flat state vector)
    h1_dims = 256        # hidden_layer_1_dims (module default)
    h2_dims = 256        # hidden_layer_2_dims (module default)

    key = jax.random.PRNGKey(0)
    k_state, k_l1, k_l2, k_v = jax.random.split(key, 4)

    state = jax.random.normal(k_state, (batch, input_dims), jnp.float32)
    w1, b1 = init_linear(k_l1, input_dims, h1_dims)
    w2, b2 = init_linear(k_l2, h1_dims, h2_dims)
    wv, bv = init_linear(k_v, h2_dims, 1)          # wv: [h2, 1], bv: [1, 1]

    params = prepare_value_params(w1, b1, w2, b2, wv, bv)   # one-time, outside jit
    v = value_network_forward(state, *params)               # B=250 -> tm=128, 2 grid steps
    v = jax.block_until_ready(v)

    # Pure-JAX f32 reference.
    ref = jnp.maximum(state @ w1 + b1, 0.0)
    ref = jnp.maximum(ref @ w2 + b2, 0.0)
    ref = ref @ wv + bv

    assert v.shape == (batch, 1)
    # bf16 MXU operands (and bf16 elementwise on v6e/v7x) -> looser tolerance than pure f32.
    assert jnp.allclose(v, ref, atol=5e-2, rtol=5e-2), "mismatch vs JAX reference"

    print("KERNEL_OK")
</pallas_src>

<mosaic_0001>
module attributes {stable_mosaic.version = 11 : i64} {
  func.func @_value_net_kernel(%arg0: i32, %arg1: memref<128x8xf32, #tpu.memory_space<vmem>>, %arg2: memref<8x256xf32, #tpu.memory_space<vmem>>, %arg3: memref<1x256xbf16, #tpu.memory_space<vmem>>, %arg4: memref<256x256xbf16, #tpu.memory_space<vmem>>, %arg5: memref<1x256xbf16, #tpu.memory_space<vmem>>, %arg6: memref<1x256xbf16, #tpu.memory_space<vmem>>, %arg7: memref<1x1xf32, #tpu.memory_space<smem>>, %arg8: memref<1x128xf32, #tpu.memory_space<vmem>>) attributes {dimension_semantics = [#tpu.dimension_semantics<parallel>], iteration_bounds = array<i64: 2>, scalar_prefetch = 0 : i64, scratch_operands = 0 : i64, tpu.core_type = #tpu.core_type<tc>, window_params = [{transform_indices = @transform_0, window_bounds = array<i64: 128, 8>}, {pipeline_mode = #tpu.pipeline_mode<synchronous>, transform_indices = @transform_1, window_bounds = array<i64: 8, 256>}, {pipeline_mode = #tpu.pipeline_mode<synchronous>, transform_indices = @transform_2, window_bounds = array<i64: 1, 256>}, {pipeline_mode = #tpu.pipeline_mode<synchronous>, transform_indices = @transform_3, window_bounds = array<i64: 256, 256>}, {pipeline_mode = #tpu.pipeline_mode<synchronous>, transform_indices = @transform_4, window_bounds = array<i64: 1, 256>}, {pipeline_mode = #tpu.pipeline_mode<synchronous>, transform_indices = @transform_5, window_bounds = array<i64: 1, 256>}, {transform_indices = @transform_6, window_bounds = array<i64: 1, 1>}, {transform_indices = @transform_7, window_bounds = array<i64: 1, 128>}]} {
    %c0 = arith.constant 0 : index
    %c0_0 = arith.constant 0 : index
    %0 = vector.load %arg1[%c0, %c0_0] : memref<128x8xf32, #tpu.memory_space<vmem>>, vector<128x8xf32>
    %c0_1 = arith.constant 0 : index
    %c0_2 = arith.constant 0 : index
    %1 = vector.load %arg2[%c0_1, %c0_2] : memref<8x256xf32, #tpu.memory_space<vmem>>, vector<8x256xf32>
    %cst = arith.constant dense<0.000000e+00> : vector<128x256xf32>
    %2 = tpu.matmul %0, %1, %cst {dimension_numbers = #tpu.dot_dimension_numbers<[1], [0], [0], [1], [0, 0, 1, 1], [], []>} : vector<128x8xf32>, vector<8x256xf32>, vector<128x256xf32> -> vector<128x256xf32>
    %3 = arith.truncf %2 : vector<128x256xf32> to vector<128x256xbf16>
    %c0_3 = arith.constant 0 : index
    %c0_4 = arith.constant 0 : index
    %4 = vector.load %arg3[%c0_3, %c0_4] : memref<1x256xbf16, #tpu.memory_space<vmem>>, vector<1x256xbf16>
    %5 = vector.broadcast %4 : vector<1x256xbf16> to vector<128x256xbf16>
    %6 = arith.addf %3, %5 : vector<128x256xbf16>
    %cst_5 = arith.constant 0.000000e+00 : bf16
    %7 = vector.broadcast %cst_5 : bf16 to vector<128x256xbf16>
    %8 = arith.maximumf %6, %7 : vector<128x256xbf16>
    %c0_6 = arith.constant 0 : index
    %c0_7 = arith.constant 0 : index
    %9 = vector.load %arg4[%c0_6, %c0_7] : memref<256x256xbf16, #tpu.memory_space<vmem>>, vector<256x256xbf16>
    %cst_8 = arith.constant dense<0.000000e+00> : vector<128x256xf32>
    %10 = tpu.matmul %8, %9, %cst_8 {dimension_numbers = #tpu.dot_dimension_numbers<[1], [0], [0], [1], [0, 0, 1, 1], [], []>} : vector<128x256xbf16>, vector<256x256xbf16>, vector<128x256xf32> -> vector<128x256xf32>
    %11 = arith.truncf %10 : vector<128x256xf32> to vector<128x256xbf16>
    %c0_9 = arith.constant 0 : index
    %c0_10 = arith.constant 0 : index
    %12 = vector.load %arg5[%c0_9, %c0_10] : memref<1x256xbf16, #tpu.memory_space<vmem>>, vector<1x256xbf16>
    %13 = vector.broadcast %12 : vector<1x256xbf16> to vector<128x256xbf16>
    %14 = arith.addf %11, %13 : vector<128x256xbf16>
    %cst_11 = arith.constant 0.000000e+00 : bf16
    %15 = vector.broadcast %cst_11 : bf16 to vector<128x256xbf16>
    %16 = arith.maximumf %14, %15 : vector<128x256xbf16>
    %c0_12 = arith.constant 0 : index
    %c0_13 = arith.constant 0 : index
    %17 = vector.load %arg6[%c0_12, %c0_13] : memref<1x256xbf16, #tpu.memory_space<vmem>>, vector<1x256xbf16>
    %18 = vector.broadcast %17 : vector<1x256xbf16> to vector<128x256xbf16>
    %19 = arith.mulf %16, %18 : vector<128x256xbf16>
    %20 = arith.extf %19 : vector<128x256xbf16> to vector<128x256xf32>
    %cst_14 = arith.constant dense<0.000000e+00> : vector<128xf32>
    %21 = vector.multi_reduction <add>, %20, %cst_14 [1] : vector<128x256xf32> to vector<128xf32>
    %c0_15 = arith.constant 0 : index
    %c0_16 = arith.constant 0 : index
    %22 = memref.load %arg7[%c0_15, %c0_16] : memref<1x1xf32, #tpu.memory_space<smem>>
    %23 = vector.broadcast %22 : f32 to vector<128xf32>
    %24 = arith.addf %21, %23 : vector<128xf32>
    %25 = vector.shape_cast %24 : vector<128xf32> to vector<1x128xf32>
    %c0_17 = arith.constant 0 : index
    %c0_18 = arith.constant 0 : index
    %26 = vector.load %arg8[%c0_17, %c0_18] : memref<1x128xf32, #tpu.memory_space<vmem>>, vector<1x128xf32>
    tpu.vector_store %arg8[%c0_17, %c0_18], %25 {strides = array<i32>} : memref<1x128xf32, #tpu.memory_space<vmem>>, vector<1x128xf32>,
    return
  }
  func.func @transform_0(%arg0: i32) -> (i32, i32) {
    %c0_i32 = arith.constant 0 : i32
    %c0_i32_0 = arith.constant 0 : i32
    return %arg0, %c0_i32 : i32, i32
  }
  func.func @transform_1(%arg0: i32) -> (i32, i32) {
    %c0_i32 = arith.constant 0 : i32
    %c0_i32_0 = arith.constant 0 : i32
    %c0_i32_1 = arith.constant 0 : i32
    return %c0_i32, %c0_i32_0 : i32, i32
  }
  func.func @transform_2(%arg0: i32) -> (i32, i32) {
    %c0_i32 = arith.constant 0 : i32
    %c0_i32_0 = arith.constant 0 : i32
    %c0_i32_1 = arith.constant 0 : i32
    return %c0_i32, %c0_i32_0 : i32, i32
  }
  func.func @transform_3(%arg0: i32) -> (i32, i32) {
    %c0_i32 = arith.constant 0 : i32
    %c0_i32_0 = arith.constant 0 : i32
    %c0_i32_1 = arith.constant 0 : i32
    return %c0_i32, %c0_i32_0 : i32, i32
  }
  func.func @transform_4(%arg0: i32) -> (i32, i32) {
    %c0_i32 = arith.constant 0 : i32
    %c0_i32_0 = arith.constant 0 : i32
    %c0_i32_1 = arith.constant 0 : i32
    return %c0_i32, %c0_i32_0 : i32, i32
  }
  func.func @transform_5(%arg0: i32) -> (i32, i32) {
    %c0_i32 = arith.constant 0 : i32
    %c0_i32_0 = arith.constant 0 : i32
    %c0_i32_1 = arith.constant 0 : i32
    return %c0_i32, %c0_i32_0 : i32, i32
  }
  func.func @transform_6(%arg0: i32) -> (i32, i32) {
    %c0_i32 = arith.constant 0 : i32
    %c0_i32_0 = arith.constant 0 : i32
    %c0_i32_1 = arith.constant 0 : i32
    return %c0_i32, %c0_i32_0 : i32, i32
  }
  func.func @transform_7(%arg0: i32) -> (i32, i32) {
    %c0_i32 = arith.constant 0 : i32
    %c0_i32_0 = arith.constant 0 : i32
    return %c0_i32, %arg0 : i32, i32
  }
}

</mosaic_0001>

<bundles_post_ra>
// kernel: value_network_forward.1
= control target key start
LH: loop header
LB: loop body
LE: loop exit
PB: predicated region body
PF: predicated region fallthrough
CT: control target
= control target key end

     0   :  { %s2495_s0 = inlined_call_operand.vmem [shape: f32[250,8], index: 0, kind: input, shape index: {}]   ;;  %s2496_s1 = inlined_call_operand.vmem [shape: f32[8,256], index: 1, kind: input, shape index: {}]   ;;  %s2497_s2 = inlined_call_operand.vmem [shape: bf16[1,256], index: 2, kind: input, shape index: {}]   ;;  %s2498_s3 = inlined_call_operand.vmem [shape: bf16[256,256], index: 3, kind: input, shape index: {}]   ;;  %s2499_s4 = inlined_call_operand.vmem [shape: bf16[1,256], index: 4, kind: input, shape index: {}]   ;;  %s2500_s5 = inlined_call_operand.hbm [shape: bf16[1,256], index: 5, kind: input, shape index: {}]   ;;  %s2501_s6 = inlined_call_operand.<no memory space> [shape: f32[1,1], index: 6, kind: input, shape index: {}]   ;;  %s2502_s7 = inlined_call_operand.hbm [shape: f32[1,250], index: 7, kind: output, shape index: {}]  }
   0x1   :  { %12 = sst [smem:[#allocation2]] %s2501_s6 }
   0x2   :  { %13 = vsyncpa [#allocation4], 0 }
   0x3   :  { %14 = vsyncpa [#allocation5], 0 }
   0x4   :  { %16 = vsyncpa [#allocation5 + $0x1], 0  ;;  %s2005_s26 = smov 0   ;;  %s2007_s27 = smov 0  }
   0x5   :  { %s2009_s28 = smov 0   ;;  %s2011_s29 = smov 0  }
   0x6 LB: > { %s2026_s6 = sadd.s32 4294967295, %s1959_s29   ;;  %s1609_s30 = sadd.s32 4294967294, %s1959_s29   ;;  %s1959_s29 = sphi %s2011_s29, %s2508_s29   ;;  %s1955_s28 = sphi %s2009_s28, %s2507_s28   ;;  %s1951_s27 = sphi %s2007_s27, %s2506_s27   ;;  %s1947_s26 = sphi %s2005_s26, %s2505_s26  }
   0x7   : > { %s2030_s8 = sadd.s32 1, %s1959_s29   ;;  %s181_s9 = sadd.s32 1, %s1955_s28 }
   0x8   : > { %s178_s10 = ssub.s32 %s1959_s29, %s2030_s8  ;;  %p191_p0 = scmp.ne.s32.totalorder %s1955_s28, %s1951_s27 }
   0x9   : > { %p179_p1 = scmp.eq.s32.totalorder %s178_s10, 0  ;;  %p192_p2 = scmp.eq.s32.totalorder %s2026_s6, 1 }
   0xa   : > { %p197_p3 = scmp.ne.s32.totalorder %s1951_s27, %s1947_s26  ;;  %p198_p4 = scmp.eq.s32.totalorder %s1609_s30, 1 }
   0xb   : > { %s2041_s11 = scalar_select %p179_p1, %s1955_s28, %s181_s9  }
   0xc   : > { %p2043_p5 = por %p192_p2, %p191_p0  ;;  %p2047_p6 = por %p198_p4, %p197_p3 }
   0xd   : > { %p1610_p7 = scmp.ge.s32.totalorder %s1959_s29, 1  ;;  %p205_p8 = scmp.lt.s32.totalorder %s1959_s29, 3 }
   0xe   : > { %p1827_p9 = scmp.eq.s32.totalorder %s2026_s6, 0  ;;  %s229_s16 = sshll.u32 %s2500_s5, 4  ;;  %s230_s16 = int_to_ptr.hbm [resolvable:$true] %s229_s16 }
   0xf   : > { %p206_p10 = pnand %p1610_p7, %p205_p8  ;;  %s1961_s17 = smov [#allocation3]  }
  0x10   : > { %s231_s18 = sshll.u32 %s1961_s17, 4  ;;  %s232_s18 = int_to_ptr.vmem [resolvable:$true] %s231_s18 }
  0x11   : > { %p1819_p11 = pneg %p206_p10  ;;  %256 = sbr.rel (%p206_p10) target bundleno = 573 (0x23d), region = 48 }
  0x13   : > { %p1820_p12 = pnand %p1827_p9, %p1819_p11 }
  0x15   : > { %1822 = dma.hbm_to_vmem [thread:$0]  (!%p1820_p12), %s230_s16, 32, %s232_s18, [#allocation4]  }
  0x16   : > { %1938 = dma.done.wait (%p1827_p9), [#allocation4], 32  }
  0x17   : > { %1940 = vsyncadd (%p1827_p9), [#allocation4], 4294967264  ;;  %s1615_s19 = sshll.u32 %s2026_s6, 4  ;;  %vm312_vm0 = vcmask 64512   ;;  %v310_v0 = vld [vmem:[%s2496_s1] sm:$0xff]  ;;  %v311_v1 = vld [vmem:[%s2496_s1 + $0x8] sm:$0xff] }
  0x18   : > { %p289_p13 = scmp.lt.s32.totalorder %s1615_s19, 31  ;;  %376 = vmatpush.msra.mxu0 %v310_v0  ;;  %441 = vmatpush.msra.mxu1 %v311_v1  ;;  %v1793_v10 = vld [vmem:[%s2498_s3 + $0x74] sm:$0xf]  ;;  %v1709_v11 = vld [vmem:[%s2498_s3 + $0x78] sm:$0xf0]  ;;  %s1430_s16 = sld [smem:[#allocation2]] }
  0x19   : > { %1812 = vmatpush.msra.mxu3 %v311_v1  ;;  %1811 = vmatpush.msra.mxu2 %v310_v0  ;;  %v1771_v12 = vld [vmem:[%s2498_s3 + $0xf0] sm:$0xf]  ;;  %v1810_v13 = vld [vmem:[%s2498_s3 + $0xf4] sm:$0xf0]  ;;  %v1712_v14 = vor.u32 %v1793_v10, %v1709_v11  ;;  %v1809_v16 = vld [vmem:[%s2498_s3 + $0xf4] sm:$0xf] }
  0x1a   : > { %s2510_s19 = smov (!%p289_p13, %s1615_s19), 31  ;;  %v1772_v15 = vor.u32 %v1810_v13, %v1771_v12  ;;  %v1773_v17 = vld [vmem:[%s2498_s3 + $0xf8] sm:$0xf0]  ;;  %v1791_v20 = vld [vmem:[%s2498_s3 + $0x64] sm:$0xf]  ;;  %vm1469_vm1 = vcmask 130112  }
  0x1b   : > { %s1616_s20 = sshll.u32 %s2510_s19, 3  ;;  %v1776_v19 = vor.u32 %v1809_v16, %v1773_v17  ;;  %v1701_v21 = vld [vmem:[%s2498_s3 + $0x68] sm:$0xf0]  ;;  %v1707_v22 = vld [vmem:[%s2498_s3 + $0x70] sm:$0xf]  ;;  %970 = vmatpush.bf16.msrb.mxu0 %v1712_v14  ;;  %vm1473_vm2 = vcmask 195712  }
  0x1c   : > { %s2061_s23 = scalar_lea.vmem %s2495_s0, %s1616_s20  ;;  %921 = vmatpush.bf16.msrb.mxu3 %v1772_v15  ;;  %v1794_v23 = vld [vmem:[%s2498_s3 + $0x74] sm:$0xf0]  ;;  %v1763_v24 = vld [vmem:[%s2498_s3 + $0xe0] sm:$0xf]  ;;  %v1808_v25 = vld [vmem:[%s2498_s3 + $0xe4] sm:$0xf0]  ;;  %v1704_v30 = vor.u32 %v1791_v20, %v1701_v21  ;;  %s1538_s20 = scalar_lea.hbm %s2502_s7, %s2026_s6 }
  0x1d   : > { %v294_v2 = vld [vmem:[%s2061_s23] sm:$0xff]  ;;  %v295_v3 = vld [vmem:[%s2061_s23 + $0x8] sm:$0xff]  ;;  %v296_v4 = vld [vmem:[%s2061_s23 + $0x10] sm:$0xff]  ;;  %1019 = vmatpush.bf16.msrb.mxu1 %v1776_v19  ;;  %v1708_v27 = vor.u32 %v1794_v23, %v1707_v22  ;;  %v1764_v31 = vor.u32 %v1808_v25, %v1763_v24  ;;  %vm1477_vm3 = vcmask 261312   ;;  %vm1481_vm4 = vcmask 326912   ;;  %s286_s17 = sand.u32 1, %s1951_s27  }
  0x1e   : > { %1617 = vmatmul.msk.f32.vlgmr.msra.gmra.mxu0 %vm312_vm0, %v294_v2  ;;  %1633 = vmatmul.msk.f32.vlgmr.msra.gmra.mxu1 %vm312_vm0, %v294_v2  ;;  %v2079_v5 = vld [vmem:[%s2061_s23 + $0x40] sm:$0xff]  ;;  %v297_v6 = vld [vmem:[%s2061_s23 + $0x18] sm:$0xff]  ;;  %v303_v7 = vld [vmem:[%s2061_s23 + $0x48] sm:$0xff]  ;;  %vm1485_vm5 = vcmask 392512   ;;  %vm1489_vm6 = vcmask 458112   ;;  %vm1493_vm7 = vcmask 523712  }
  0x1f   : > { %1641 = vmatmul.msk.f32.vlgmr.msra.gmra.mxu3 %vm312_vm0, %v2079_v5  ;;  %1626 = vmatmul.msk.f32.vlgmr.msra.gmra.mxu2 %vm312_vm0, %v303_v7  ;;  %v298_v8 = vld [vmem:[%s2061_s23 + $0x20] sm:$0xff]  ;;  %v304_v9 = vld [vmem:[%s2061_s23 + $0x50] sm:$0xff]  ;;  %v299_v18 = vld [vmem:[%s2061_s23 + $0x28] sm:$0xff]  ;;  %vm1497_vm8 = vcmask 589312   ;;  %vm1501_vm9 = vcmask 654912   ;;  %vm1505_vm10 = vcmask 720512  }
  0x20   : > { %v305_v26 = vld [vmem:[%s2061_s23 + $0x58] sm:$0xff]  ;;  %v1807_v28 = vld [vmem:[%s2498_s3 + $0xe4] sm:$0xf]  ;;  %v1765_v29 = vld [vmem:[%s2498_s3 + $0xe8] sm:$0xf0]  ;;  %872 = vmatpush.bf16.msrb.mxu2 %v1708_v27  ;;  %971 = vmatpush.bf16.msrb.mxu0 %v1704_v30  ;;  %vm1509_vm11 = vcmask 786112  }
  0x21   : > { %v1699_v32 = vld [vmem:[%s2498_s3 + $0x60] sm:$0xf]  ;;  %v1792_v33 = vld [vmem:[%s2498_s3 + $0x64] sm:$0xf0]  ;;  %v1755_v34 = vld [vmem:[%s2498_s3 + $0xd0] sm:$0xf]  ;;  %v1768_v35 = vor.u32 %v1807_v28, %v1765_v29  ;;  %922 = vmatpush.bf16.msrb.mxu3 %v1764_v31 }
  0x22   : > { %v1700_v36 = vor.u32 %v1792_v33, %v1699_v32  ;;  %v1806_v37 = vld [vmem:[%s2498_s3 + $0xd4] sm:$0xf0]  ;;  %v1789_v38 = vld [vmem:[%s2498_s3 + $0x54] sm:$0xf]  ;;  %v1693_v39 = vld [vmem:[%s2498_s3 + $0x58] sm:$0xf0] }
  0x23   : > { %v1691_v40 = vld [vmem:[%s2498_s3 + $0x50] sm:$0xf]  ;;  %v1790_v41 = vld [vmem:[%s2498_s3 + $0x54] sm:$0xf0]  ;;  %v1805_v42 = vld [vmem:[%s2498_s3 + $0xd4] sm:$0xf]  ;;  %v1756_v44 = vor.u32 %v1806_v37, %v1755_v34  ;;  %v1696_v45 = vor.u32 %v1789_v38, %v1693_v39  ;;  %1020 = vmatpush.bf16.msrb.mxu1 %v1768_v35 }
  0x24   : > { %v1757_v43 = vld [vmem:[%s2498_s3 + $0xd8] sm:$0xf0]  ;;  %v1747_v46 = vld [vmem:[%s2498_s3 + $0xc0] sm:$0xf]  ;;  %v1804_v47 = vld [vmem:[%s2498_s3 + $0xc4] sm:$0xf0]  ;;  %873 = vmatpush.bf16.msrb.mxu2 %v1700_v36  ;;  %v1692_v48 = vor.u32 %v1790_v41, %v1691_v40 }
  0x25   : > { %v1760_v49 = vor.u32 %v1805_v42, %v1757_v43  ;;  %v1787_v50 = vld [vmem:[%s2498_s3 + $0x44] sm:$0xf]  ;;  %v1685_v51 = vld [vmem:[%s2498_s3 + $0x48] sm:$0xf0]  ;;  %v1683_v52 = vld [vmem:[%s2498_s3 + $0x40] sm:$0xf]  ;;  %923 = vmatpush.bf16.msrb.mxu3 %v1756_v44  ;;  %972 = vmatpush.bf16.msrb.mxu0 %v1696_v45  ;;  %v1748_v58 = vor.u32 %v1804_v47, %v1747_v46 }
  0x26   : > { %1618 = vmatmul.msk.f32.gmra.mxu0 %vm312_vm0, %v295_v3  ;;  %1634 = vmatmul.msk.f32.gmra.mxu1 %vm312_vm0, %v295_v3  ;;  %v1788_v53 = vld [vmem:[%s2498_s3 + $0x44] sm:$0xf0]  ;;  %v1803_v54 = vld [vmem:[%s2498_s3 + $0xc4] sm:$0xf]  ;;  %v1749_v55 = vld [vmem:[%s2498_s3 + $0xc8] sm:$0xf0]  ;;  %v1688_v59 = vor.u32 %v1787_v50, %v1685_v51 }
  0x27   : > { %1642 = vmatmul.msk.f32.gmra.mxu3 %vm312_vm0, %v303_v7  ;;  %1627 = vmatmul.msk.f32.gmra.mxu2 %vm312_vm0, %v304_v9  ;;  %v300_v56 = vld [vmem:[%s2061_s23 + $0x30] sm:$0xff]  ;;  %v306_v57 = vld [vmem:[%s2061_s23 + $0x60] sm:$0xff]  ;;  %v1802_v61 = vld [vmem:[%s2498_s3 + $0xb4] sm:$0xf0]  ;;  %v1684_v62 = vor.u32 %v1788_v53, %v1683_v52  ;;  %v1752_v63 = vor.u32 %v1803_v54, %v1749_v55  ;;  %vm1513_vm12 = vcmask 851712   ;;  %vm1517_vm13 = vcmask 917312  }
  0x28   : > { %v1739_v60 = vld [vmem:[%s2498_s3 + $0xb0] sm:$0xf]  ;;  %874 = vmatpush.bf16.msrb.mxu2 %v1692_v48  ;;  %1021 = vmatpush.bf16.msrb.mxu1 %v1760_v49  ;;  %v1785_v0 = vld [vmem:[%s2498_s3 + $0x34] sm:$0xf]  ;;  %v1677_v1 = vld [vmem:[%s2498_s3 + $0x38] sm:$0xf0] }
  0x29   : > { %v1675_v2 = vld [vmem:[%s2498_s3 + $0x30] sm:$0xf]  ;;  %v1786_v3 = vld [vmem:[%s2498_s3 + $0x34] sm:$0xf0]  ;;  %924 = vmatpush.bf16.msrb.mxu3 %v1748_v58  ;;  %973 = vmatpush.bf16.msrb.mxu0 %v1688_v59  ;;  %v1740_v7 = vor.u32 %v1802_v61, %v1739_v60  ;;  %v1800_v12 = vld [vmem:[%s2498_s3 + $0xa4] sm:$0xf0] }
  0x2a   : > { %v1676_v10 = vor.u32 %v1786_v3, %v1675_v2  ;;  %v1783_v13 = vld [vmem:[%s2498_s3 + $0x24] sm:$0xf]  ;;  %v1669_v14 = vld [vmem:[%s2498_s3 + $0x28] sm:$0xf0]  ;;  %v1667_v15 = vld [vmem:[%s2498_s3 + $0x20] sm:$0xf] }
  0x2b   : > { %v1784_v16 = vld [vmem:[%s2498_s3 + $0x24] sm:$0xf0]  ;;  %v301_v17 = vld [vmem:[%s2061_s23 + $0x38] sm:$0xff]  ;;  %v1672_v20 = vor.u32 %v1783_v13, %v1669_v14  ;;  %v308_v22 = vld [vmem:[%s2061_s23 + $0x70] sm:$0xff]  ;;  %vm1521_vm14 = vcmask 982912   ;;  %s287_s21 = scalar_lea.vmem [#allocation6], %s286_s17 }
  0x2c   : > { %875 = vmatpush.bf16.msrb.mxu2 %v1684_v62  ;;  %1022 = vmatpush.bf16.msrb.mxu1 %v1752_v63  ;;  %v1668_v21 = vor.u32 %v1784_v16, %v1667_v15  ;;  %v309_v23 = vld [vmem:[%s2061_s23 + $0x78] sm:$0xff]  ;;  %v507_v24 = vld [vmem:[%s2497_s2] sm:$0x3]  ;;  %v1799_v25 = vld [vmem:[%s2498_s3 + $0xa4] sm:$0xf]  ;;  %s1540_s22 = sshll.u32 %s287_s21, 4  ;;  %s1541_s22 = int_to_ptr.vmem [resolvable:$true] %s1540_s22 }
  0x2d   : > { %925 = vmatpush.bf16.msrb.mxu3 %v1740_v7  ;;  %509 = vst [vmem:[#allocation1] ss:$9 sm:$0xff] %v507_v24  ;;  %v1084_v29 = vld [vmem:[%s2499_s4] sm:$0x3]  ;;  %v1723_v30 = vld [vmem:[%s2498_s3 + $0x90] sm:$0xf] }
  0x2e   : > { %1619 = vmatmul.msk.f32.gmra.mxu0 %vm312_vm0, %v296_v4  ;;  %1635 = vmatmul.msk.f32.gmra.mxu1 %vm312_vm0, %v296_v4  ;;  %v1801_v4 = vld [vmem:[%s2498_s3 + $0xb4] sm:$0xf]  ;;  %v1798_v31 = vld [vmem:[%s2498_s3 + $0x94] sm:$0xf0]  ;;  %v1659_v33 = vld [vmem:[%s2498_s3 + $0x10] sm:$0xf] }
  0x2f   : > { %1643 = vmatmul.msk.f32.gmra.mxu3 %vm312_vm0, %v304_v9  ;;  %1628 = vmatmul.msk.f32.gmra.mxu2 %vm312_vm0, %v305_v26  ;;  %v1731_v9 = vld [vmem:[%s2498_s3 + $0xa0] sm:$0xf]  ;;  %v1724_v32 = vor.u32 %v1798_v31, %v1723_v30  ;;  %v1782_v34 = vld [vmem:[%s2498_s3 + $0x14] sm:$0xf0]  ;;  %v1781_v36 = vld [vmem:[%s2498_s3 + $0x14] sm:$0xf] }
  0x30   : > { %v1732_v19 = vor.u32 %v1800_v12, %v1731_v9  ;;  %876 = vmatpush.bf16.msrb.mxu2 %v1676_v10  ;;  %v1660_v35 = vor.u32 %v1782_v34, %v1659_v33  ;;  %v1661_v37 = vld [vmem:[%s2498_s3 + $0x18] sm:$0xf0]  ;;  %v1797_v38 = vld [vmem:[%s2498_s3 + $0x94] sm:$0xf]  ;;  %v1715_v42 = vld [vmem:[%s2498_s3 + $0x80] sm:$0xf] }
  0x31   : > { %v1664_v39 = vor.u32 %v1781_v36, %v1661_v37  ;;  %v1725_v40 = vld [vmem:[%s2498_s3 + $0x98] sm:$0xf0]  ;;  %v1796_v43 = vld [vmem:[%s2498_s3 + $0x84] sm:$0xf0]  ;;  %v1651_v44 = vld [vmem:[%s2498_s3] sm:$0xf] }
  0x32   : > { %926 = vmatpush.bf16.msrb.mxu3 %v1732_v19  ;;  %v1728_v41 = vor.u32 %v1797_v38, %v1725_v40  ;;  %v1716_v45 = vor.u32 %v1796_v43, %v1715_v42  ;;  %v1780_v46 = vld [vmem:[%s2498_s3 + $0x4] sm:$0xf0]  ;;  %v1779_v47 = vld [vmem:[%s2498_s3 + $0x4] sm:$0xf]  ;;  %v1653_v48 = vld [vmem:[%s2498_s3 + $0x8] sm:$0xf0] }
  0x33   : > { %v1652_v49 = vor.u32 %v1780_v46, %v1651_v44  ;;  %v1656_v50 = vor.u32 %v1779_v47, %v1653_v48  ;;  %v1795_v51 = vld [vmem:[%s2498_s3 + $0x84] sm:$0xf]  ;;  %v1717_v52 = vld [vmem:[%s2498_s3 + $0x88] sm:$0xf0]  ;;  %s1542_s24 = sshll.u32 %s1538_s20, 4  ;;  %vm1525_vm15 = vcmask 1048512   ;;  %s1543_s24 = int_to_ptr.hbm [resolvable:$true] %s1542_s24 }
  0x34   : > { %877 = vmatpush.bf16.msrb.mxu2 %v1668_v21  ;;  %v511_v27 = vld [vmem:[#allocation1 + $0x9] sm:$0xff]  ;;  %v1720_v53 = vor.u32 %v1795_v51, %v1717_v52  ;;  %s1530_s6 = scalar_lea.sflag [#allocation5], %s286_s17  ;;  %s1907_s25 = sshra.s32 %s1543_s24, 4  ;;  %s1908_s25 = int_to_ptr.hbm [resolvable:$true] %s1907_s25 }
  0x35   : > { %v515_v55 = vpack.i.b16 %v511_v27, %v511_v27  ;;  %s1909_s30 = scalar_lea.hbm %s1908_s25, 1  ;;  %s1913_s10 = scalar_lea.hbm %s2502_s7, 2 }
  0x36   : > { %1620 = vmatmul.msk.f32.gmra.mxu0 %vm312_vm0, %v297_v6  ;;  %1636 = vmatmul.msk.f32.gmra.mxu1 %vm312_vm0, %v297_v6  ;;  %v1741_v6 = vld [vmem:[%s2498_s3 + $0xb8] sm:$0xf0]  ;;  %p1910_p0 = scmp.ne.s32.totalorder %s1908_s25, %s1909_s30  ;;  %p1914_p3 = scmp.lt.s32.totalorder %s1908_s25, %s2502_s7 }
  0x37   : > { %1644 = vmatmul.msk.f32.gmra.mxu3 %vm312_vm0, %v305_v26  ;;  %1629 = vmatmul.msk.f32.gmra.mxu2 %vm312_vm0, %v306_v57  ;;  %v1744_v11 = vor.u32 %v1801_v4, %v1741_v6  ;;  %v510_v26 = vld [vmem:[#allocation1] sm:$0xff]  ;;  %v517_v60 = vperm.slane %v515_v55, 0  ;;  %p1915_p4 = scmp.lt.s32.totalorder %s1913_s10, %s1909_s30 }
  0x38   : > { %1086 = vst [vmem:[#allocation1] ss:$9 sm:$0xff] %v1084_v29  ;;  %927 = vmatpush.bf16.msrb.mxu3 %v1724_v32  ;;  %878 = vmatpush.bf16.msrb.mxu2 %v1660_v35  ;;  %v512_v54 = vpack.i.b16 %v510_v26, %v510_v26  ;;  %p1911_p1 = pnand %p1910_p0, %p2043_p5 }
  0x39   : > { %1023 = vmatpush.bf16.msrb.mxu1 %v1744_v11  ;;  %p1916_p7 = por %p1915_p4, %p1914_p3 }
  0x3a   : > { %v514_v59 = vperm.slane %v512_v54, 0  ;;  %p1912_p2 = pneg %p1911_p1 }
  0x3c   : > { %928 = vmatpush.bf16.msrb.mxu3 %v1716_v45  ;;  %879 = vmatpush.bf16.msrb.mxu2 %v1652_v49  ;;  %v2319_v63 = vunpack.c.l.bf16 %v514_v59  ;;  %p1917_p8 = pnand %p1916_p7, %p1912_p2 }
  0x3e   : > { %1621 = vmatmul.msk.f32.gmra.mxu0 %vm312_vm0, %v298_v8  ;;  %1637 = vmatmul.msk.f32.gmra.mxu1 %vm312_vm0, %v298_v8  ;;  %v1680_v8 = vor.u32 %v1785_v0, %v1677_v1  ;;  %v2321_v0 = vunpack.c.l.bf16 %v517_v60 }
  0x3f   : > { %1645 = vmatmul.msk.f32.gmra.mxu3 %vm312_vm0, %v306_v57 }
  0x40   : > { %974 = vmatpush.bf16.msrb.mxu0 %v1680_v8 }
  0x44   : > { %975 = vmatpush.bf16.msrb.mxu0 %v1672_v20 }
  0x46   : > { %1622 = vmatmul.msk.f32.gmra.mxu0 %vm312_vm0, %v299_v18  ;;  %1638 = vmatmul.msk.f32.gmra.mxu1 %vm312_vm0, %v299_v18  ;;  %v307_v18 = vld [vmem:[%s2061_s23 + $0x68] sm:$0xff] }
  0x47   : > { %1630 = vmatmul.msk.f32.gmra.mxu2 %vm312_vm0, %v307_v18  ;;  %1646 = vmatmul.msk.f32.gmra.mxu3 %vm312_vm0, %v307_v18 }
  0x48   : > { %976 = vmatpush.bf16.msrb.mxu0 %v1664_v39 }
  0x4c   : > { %977 = vmatpush.bf16.msrb.mxu0 %v1656_v50 }
  0x4e   : > { %1623 = vmatmul.msk.f32.gmra.mxu0 %vm312_vm0, %v300_v56  ;;  %1639 = vmatmul.msk.f32.gmra.mxu1 %vm312_vm0, %v300_v56 }
  0x4f   : > { %1631 = vmatmul.msk.f32.gmra.mxu2 %vm312_vm0, %v308_v22  ;;  %1647 = vmatmul.msk.f32.gmra.mxu3 %vm312_vm0, %v308_v22 }
  0x56   : > { %1624 = vmatmul.msk.f32.gmra.mxu0 %vm312_vm0, %v301_v17  ;;  %1640 = vmatmul.msk.f32.gmra.mxu1 %vm312_vm0, %v301_v17 }
  0x57   : > { %1632 = vmatmul.msk.f32.gmra.mxu2 %vm312_vm0, %v309_v23  ;;  %1648 = vmatmul.msk.f32.gmra.mxu3 %vm312_vm0, %v309_v23 }
  0x5e   : > { %1625 = vmatmul.msk.f32.gmra.mxu0 %vm312_vm0, %v2079_v5  ;;  %v1733_v5 = vld [vmem:[%s2498_s3 + $0xa8] sm:$0xf0] }
  0x5f   : > { %v1736_v28 = vor.u32 %v1799_v25, %v1733_v5 }
  0x61   : > { %1024 = vmatpush.bf16.msrb.mxu1 %v1736_v28 }
  0x65   : > { %1025 = vmatpush.bf16.msrb.mxu1 %v1728_v41 }
  0x69   : > { %1026 = vmatpush.bf16.msrb.mxu1 %v1720_v53 }
  0x9b   : > { %v378_v56 = vpop.f32.mrf.mxu0  ;;  %v443_v57 = vpop.f32.mrf.mxu1 }
  0x9c   : > { %v491_v58 = vpack.c.bf16 %v443_v57, %v378_v56 }
  0x9e   : > { %v518_v61 = vunpack.c.l.bf16 %v491_v58  ;;  %v519_v62 = vunpack.c.h.bf16 %v491_v58 }
  0xa0   : > { %v552_v4 = vadd.f32 %v2319_v63, %v518_v61  ;;  %v553_v6 = vadd.f32 %v2321_v0, %v519_v62 }
  0xa2   : > { %v632_v11 = vmax.f32 %v552_v4, 0.0  ;;  %v633_v12 = vmax.f32 %v553_v6, 0.0  ;;  %v467_v41 = vpop.f32.mrf.mxu3  ;;  %v405_v59 = vpop.f32.mrf.mxu2 }
  0xa3   : > { %v381_v1 = vpop.f32.mrf.mxu0  ;;  %v446_v2 = vpop.f32.mrf.mxu1 }
  0xa4   : > { %v492_v3 = vpack.c.bf16 %v446_v2, %v381_v1 }
  0xa6   : > { %v520_v7 = vunpack.c.l.bf16 %v492_v3  ;;  %v521_v8 = vunpack.c.h.bf16 %v492_v3 }
  0xa8   : > { %v554_v9 = vadd.f32 %v2319_v63, %v520_v7  ;;  %v555_v10 = vadd.f32 %v2321_v0, %v521_v8 }
  0xaa   : > { %v634_v13 = vmax.f32 %v554_v9, 0.0  ;;  %v635_v14 = vmax.f32 %v555_v10, 0.0  ;;  %v470_v60 = vpop.f32.mrf.mxu3  ;;  %v408_v10 = vpop.f32.mrf.mxu2 }
  0xab   : > { %v384_v15 = vpop.f32.mrf.mxu0  ;;  %v449_v16 = vpop.f32.mrf.mxu1 }
  0xac   : > { %v664_v17 = vpack.c.bf16 %v634_v13, %v632_v11  ;;  %v665_v18 = vpack.c.bf16 %v635_v14, %v633_v12  ;;  %v493_v19 = vpack.c.bf16 %v449_v16, %v384_v15 }
  0xae   : > { %880 = vmatmul.bf16.vlgmr.msrb.gmra.mxu2 %v664_v17  ;;  %929 = vmatmul.bf16.vlgmr.msrb.gmra.mxu3 %v665_v18  ;;  %v522_v20 = vunpack.c.l.bf16 %v493_v19  ;;  %v523_v21 = vunpack.c.h.bf16 %v493_v19 }
  0xaf   : > { %978 = vmatmul.bf16.vlgmr.msrb.gmra.mxu0 %v664_v17  ;;  %1027 = vmatmul.bf16.vlgmr.msrb.gmra.mxu1 %v665_v18 }
  0xb0   : > { %v556_v26 = vadd.f32 %v2319_v63, %v522_v20  ;;  %v557_v27 = vadd.f32 %v2321_v0, %v523_v21  ;;  %v500_v20 = vpack.c.bf16 %v470_v60, %v405_v59 }
  0xb2   : > { %v636_v30 = vmax.f32 %v556_v26, 0.0  ;;  %v637_v32 = vmax.f32 %v557_v27, 0.0  ;;  %v473_v11 = vpop.f32.mrf.mxu3  ;;  %v411_v26 = vpop.f32.mrf.mxu2 }
  0xb3   : > { %v387_v22 = vpop.f32.mrf.mxu0  ;;  %v452_v23 = vpop.f32.mrf.mxu1 }
  0xb4   : > { %v494_v24 = vpack.c.bf16 %v452_v23, %v387_v22 }
  0xb6   : > { %v524_v25 = vunpack.c.l.bf16 %v494_v24  ;;  %v525_v5 = vunpack.c.h.bf16 %v494_v24 }
  0xb8   : > { %v558_v28 = vadd.f32 %v2319_v63, %v524_v25  ;;  %v559_v29 = vadd.f32 %v2321_v0, %v525_v5  ;;  %v536_v25 = vunpack.c.l.bf16 %v500_v20  ;;  %v537_v5 = vunpack.c.h.bf16 %v500_v20 }
  0xba   : > { %v638_v31 = vmax.f32 %v558_v28, 0.0  ;;  %v639_v33 = vmax.f32 %v559_v29, 0.0  ;;  %v476_v27 = vpop.f32.mrf.mxu3  ;;  %v570_v29 = vadd.f32 %v2319_v63, %v536_v25  ;;  %v1257_v25 = vld [vmem:[#allocation3] sm:$0x3] }
  0xbb   : > { %v390_v34 = vpop.f32.mrf.mxu0  ;;  %v455_v35 = vpop.f32.mrf.mxu1 }
  0xbc   : > { %v666_v36 = vpack.c.bf16 %v638_v31, %v636_v30  ;;  %v667_v37 = vpack.c.bf16 %v639_v33, %v637_v32  ;;  %v495_v38 = vpack.c.bf16 %v455_v35, %v390_v34  ;;  %v571_v31 = vadd.f32 %v2321_v0, %v537_v5 }
  0xbd   : > { %v650_v33 = vmax.f32 %v570_v29, 0.0 }
  0xbe   : > { %885 = vmatmul.bf16.gmra.mxu2 %v666_v36  ;;  %934 = vmatmul.bf16.gmra.mxu3 %v667_v37  ;;  %v526_v39 = vunpack.c.l.bf16 %v495_v38  ;;  %v527_v40 = vunpack.c.h.bf16 %v495_v38  ;;  %v651_v35 = vmax.f32 %v571_v31, 0.0  ;;  %v501_v38 = vpack.c.bf16 %v473_v11, %v408_v10 }
  0xbf   : > { %983 = vmatmul.bf16.gmra.mxu0 %v666_v36  ;;  %1032 = vmatmul.bf16.gmra.mxu1 %v667_v37  ;;  %v414_v36 = vpop.f32.mrf.mxu2 }
  0xc0   : > { %v560_v47 = vadd.f32 %v2319_v63, %v526_v39  ;;  %v561_v48 = vadd.f32 %v2321_v0, %v527_v40  ;;  %v502_v39 = vpack.c.bf16 %v476_v27, %v411_v26 }
  0xc2   : > { %v640_v51 = vmax.f32 %v560_v47, 0.0  ;;  %v641_v53 = vmax.f32 %v561_v48, 0.0  ;;  %v479_v37 = vpop.f32.mrf.mxu3 }
  0xc3   : > { %v393_v42 = vpop.f32.mrf.mxu0  ;;  %v458_v43 = vpop.f32.mrf.mxu1 }
  0xc4   : > { %v496_v44 = vpack.c.bf16 %v458_v43, %v393_v42  ;;  %v538_v42 = vunpack.c.l.bf16 %v501_v38  ;;  %v539_v43 = vunpack.c.h.bf16 %v501_v38 }
  0xc6   : > { %v528_v45 = vunpack.c.l.bf16 %v496_v44  ;;  %v529_v46 = vunpack.c.h.bf16 %v496_v44  ;;  %v540_v44 = vunpack.c.l.bf16 %v502_v39  ;;  %v573_v48 = vadd.f32 %v2321_v0, %v539_v43 }
  0xc8   : > { %v562_v49 = vadd.f32 %v2319_v63, %v528_v45  ;;  %v563_v50 = vadd.f32 %v2321_v0, %v529_v46  ;;  %v541_v45 = vunpack.c.h.bf16 %v502_v39  ;;  %v572_v46 = vadd.f32 %v2319_v63, %v538_v42 }
  0xc9   : > { %v574_v47 = vadd.f32 %v2319_v63, %v540_v44 }
  0xca   : > { %v642_v52 = vmax.f32 %v562_v49, 0.0  ;;  %v643_v54 = vmax.f32 %v563_v50, 0.0  ;;  %v575_v49 = vadd.f32 %v2321_v0, %v541_v45  ;;  %v417_v50 = vpop.f32.mrf.mxu2 }
  0xcb   : > { %v396_v55 = vpop.f32.mrf.mxu0  ;;  %v461_v56 = vpop.f32.mrf.mxu1 }
  0xcc   : > { %v668_v57 = vpack.c.bf16 %v642_v52, %v640_v51  ;;  %v669_v58 = vpack.c.bf16 %v643_v54, %v641_v53  ;;  %v497_v61 = vpack.c.bf16 %v461_v56, %v396_v55  ;;  %v482_v51 = vpop.f32.mrf.mxu3  ;;  %v652_v52 = vmax.f32 %v572_v46, 0.0 }
  0xcd   : > { %v654_v53 = vmax.f32 %v574_v47, 0.0  ;;  %v653_v54 = vmax.f32 %v573_v48, 0.0  ;;  %v655_v55 = vmax.f32 %v575_v49, 0.0  ;;  %v503_v56 = vpack.c.bf16 %v479_v37, %v414_v36 }
  0xce   : > { %890 = vmatmul.bf16.gmra.mxu2 %v668_v57  ;;  %939 = vmatmul.bf16.gmra.mxu3 %v669_v58  ;;  %v530_v62 = vunpack.c.l.bf16 %v497_v61  ;;  %v531_v1 = vunpack.c.h.bf16 %v497_v61 }
  0xcf   : > { %988 = vmatmul.bf16.gmra.mxu0 %v668_v57  ;;  %1037 = vmatmul.bf16.gmra.mxu1 %v669_v58  ;;  %v504_v57 = vpack.c.bf16 %v482_v51, %v417_v50  ;;  %v674_v58 = vpack.c.bf16 %v654_v53, %v652_v52  ;;  %v675_v59 = vpack.c.bf16 %v655_v55, %v653_v54 }
  0xd0   : > { %v564_v8 = vadd.f32 %v2319_v63, %v530_v62  ;;  %v565_v9 = vadd.f32 %v2321_v0, %v531_v1  ;;  %v542_v62 = vunpack.c.l.bf16 %v503_v56  ;;  %v543_v1 = vunpack.c.h.bf16 %v503_v56 }
  0xd2   : > { %v644_v14 = vmax.f32 %v564_v8, 0.0  ;;  %v645_v16 = vmax.f32 %v565_v9, 0.0  ;;  %v420_v60 = vpop.f32.mrf.mxu2 }
  0xd3   : > { %v399_v2 = vpop.f32.mrf.mxu0  ;;  %v464_v3 = vpop.f32.mrf.mxu1 }
  0xd4   : > { %v498_v4 = vpack.c.bf16 %v464_v3, %v399_v2  ;;  %v485_v61 = vpop.f32.mrf.mxu3  ;;  %v544_v2 = vunpack.c.l.bf16 %v504_v57  ;;  %v545_v3 = vunpack.c.h.bf16 %v504_v57 }
  0xd6   : > { %v532_v6 = vunpack.c.l.bf16 %v498_v4  ;;  %v533_v7 = vunpack.c.h.bf16 %v498_v4  ;;  %v576_v4 = vadd.f32 %v2319_v63, %v542_v62  ;;  %v579_v8 = vadd.f32 %v2321_v0, %v545_v3 }
  0xd8   : > { %v566_v12 = vadd.f32 %v2319_v63, %v532_v6  ;;  %v567_v13 = vadd.f32 %v2321_v0, %v533_v7  ;;  %v578_v6 = vadd.f32 %v2319_v63, %v544_v2  ;;  %v577_v7 = vadd.f32 %v2321_v0, %v543_v1 }
  0xd9   : > { %v656_v9 = vmax.f32 %v576_v4, 0.0 }
  0xda   : > { %v646_v15 = vmax.f32 %v566_v12, 0.0  ;;  %v647_v17 = vmax.f32 %v567_v13, 0.0  ;;  %v658_v10 = vmax.f32 %v578_v6, 0.0  ;;  %v657_v11 = vmax.f32 %v577_v7, 0.0  ;;  %v423_v13 = vpop.f32.mrf.mxu2 }
  0xdb   : > { %v402_v18 = vpop.f32.mrf.mxu0  ;;  %v659_v12 = vmax.f32 %v579_v8, 0.0 }
  0xdc   : > { %v499_v19 = vpack.c.bf16 %v467_v41, %v402_v18  ;;  %v670_v21 = vpack.c.bf16 %v646_v15, %v644_v14  ;;  %v671_v22 = vpack.c.bf16 %v647_v17, %v645_v16  ;;  %v488_v14 = vpop.f32.mrf.mxu3  ;;  %v505_v15 = vpack.c.bf16 %v485_v61, %v420_v60 }
  0xdd   : > { %v506_v16 = vpack.c.bf16 %v488_v14, %v423_v13  ;;  %v676_v17 = vpack.c.bf16 %v658_v10, %v656_v9  ;;  %v677_v18 = vpack.c.bf16 %v659_v12, %v657_v11 }
  0xde   : > { %895 = vmatmul.bf16.gmra.mxu2 %v670_v21  ;;  %944 = vmatmul.bf16.gmra.mxu3 %v671_v22  ;;  %v534_v23 = vunpack.c.l.bf16 %v499_v19  ;;  %v535_v24 = vunpack.c.h.bf16 %v499_v19  ;;  %v546_v19 = vunpack.c.l.bf16 %v505_v15  ;;  %v547_v20 = vunpack.c.h.bf16 %v505_v15 }
  0xdf   : > { %993 = vmatmul.bf16.gmra.mxu0 %v670_v21  ;;  %1042 = vmatmul.bf16.gmra.mxu1 %v671_v22  ;;  %v548_v21 = vunpack.c.l.bf16 %v506_v16  ;;  %v549_v22 = vunpack.c.h.bf16 %v506_v16 }
  0xe0   : > { %v568_v28 = vadd.f32 %v2319_v63, %v534_v23  ;;  %v569_v30 = vadd.f32 %v2321_v0, %v535_v24  ;;  %v1087_v23 = vld [vmem:[#allocation1] sm:$0xff]  ;;  %v1088_v24 = vld [vmem:[#allocation1 + $0x9] sm:$0xff]  ;;  %v580_v5 = vadd.f32 %v2319_v63, %v546_v19  ;;  %v581_v27 = vadd.f32 %v2321_v0, %v547_v20 }
  0xe1   : > { %1259 = vst [vmem:[#allocation1] ss:$9 sm:$0xff] %v1257_v25  ;;  %v582_v26 = vadd.f32 %v2319_v63, %v548_v21  ;;  %v1089_v37 = vpack.i.b16 %v1087_v23, %v1087_v23  ;;  %v1092_v38 = vpack.i.b16 %v1088_v24, %v1088_v24 }
  0xe2   : > { %v648_v32 = vmax.f32 %v568_v28, 0.0  ;;  %v649_v34 = vmax.f32 %v569_v30, 0.0  ;;  %v583_v28 = vadd.f32 %v2321_v0, %v549_v22  ;;  %v660_v29 = vmax.f32 %v580_v5, 0.0 }
  0xe3   : > { %v662_v30 = vmax.f32 %v582_v26, 0.0  ;;  %v661_v31 = vmax.f32 %v581_v27, 0.0  ;;  %v1091_v39 = vperm.slane %v1089_v37, 0  ;;  %v1094_v63 = vperm.slane %v1092_v38, 0 }
  0xe4   : > { %v672_v40 = vpack.c.bf16 %v650_v33, %v648_v32  ;;  %v673_v41 = vpack.c.bf16 %v651_v35, %v649_v34  ;;  %v663_v32 = vmax.f32 %v583_v28, 0.0 }
  0xe5   : > { %v678_v33 = vpack.c.bf16 %v662_v30, %v660_v29  ;;  %v2355_v44 = vunpack.c.l.bf16 %v1091_v39  ;;  %v2357_v45 = vunpack.c.l.bf16 %v1094_v63 }
  0xe6   : > { %v679_v34 = vpack.c.bf16 %v663_v32, %v661_v31 }
  0xe8   : > { %v1260_v52 = vld [vmem:[#allocation1] sm:$0xff]  ;;  %v1261_v57 = vld [vmem:[#allocation1 + $0x9] sm:$0xff] }
  0xe9   : > { %v1262_v60 = vpack.i.b16 %v1260_v52, %v1260_v52  ;;  %v1265_v2 = vpack.i.b16 %v1261_v57, %v1261_v57 }
  0xeb   : > { %v1264_v7 = vperm.slane %v1262_v60, 0  ;;  %v1267_v12 = vperm.slane %v1265_v2, 0 }
  0xed   : > { %v2365_v24 = vunpack.c.l.bf16 %v1267_v12 }
  0xee   : > { %900 = vmatmul.bf16.gmra.mxu2 %v672_v40  ;;  %949 = vmatmul.bf16.gmra.mxu3 %v673_v41 }
  0xef   : > { %998 = vmatmul.bf16.gmra.mxu0 %v672_v40  ;;  %1047 = vmatmul.bf16.gmra.mxu1 %v673_v41 }
  0xfe   : > { %905 = vmatmul.bf16.gmra.mxu2 %v674_v58  ;;  %954 = vmatmul.bf16.gmra.mxu3 %v675_v59 }
  0xff   : > { %1003 = vmatmul.bf16.gmra.mxu0 %v674_v58  ;;  %1052 = vmatmul.bf16.gmra.mxu1 %v675_v59 }
 0x10e   : > { %910 = vmatmul.bf16.gmra.mxu2 %v676_v17  ;;  %959 = vmatmul.bf16.gmra.mxu3 %v677_v18 }
 0x10f   : > { %1008 = vmatmul.bf16.gmra.mxu0 %v676_v17  ;;  %1057 = vmatmul.bf16.gmra.mxu1 %v677_v18  ;;  %v2363_v18 = vunpack.c.l.bf16 %v1264_v7 }
 0x11e   : > { %915 = vmatmul.bf16.gmra.mxu2 %v678_v33  ;;  %964 = vmatmul.bf16.gmra.mxu3 %v679_v34 }
 0x11f   : > { %1013 = vmatmul.bf16.gmra.mxu0 %v678_v33  ;;  %1062 = vmatmul.bf16.gmra.mxu1 %v679_v34 }
 0x12c   : > { %v979_v35 = vpop.f32.mrf.mxu0  ;;  %v1028_v36 = vpop.f32.mrf.mxu1 }
 0x12d   : > { %v1029_v42 = vadd.f32 %v1028_v36, %v979_v35 }
 0x131   : > { %v881_v40 = vpop.f32.mrf.mxu2  ;;  %v930_v41 = vpop.f32.mrf.mxu3 }
 0x132   : > { %v931_v0 = vadd.f32 %v930_v41, %v881_v40 }
 0x134   : > { %v1068_v43 = vpack.c.bf16 %v1029_v42, %v931_v0  ;;  %v981_v46 = vpop.f32.mrf.mxu0  ;;  %v1030_v47 = vpop.f32.mrf.mxu1 }
 0x135   : > { %v1031_v55 = vadd.f32 %v1030_v47, %v981_v46 }
 0x136   : > { %v1095_v48 = vunpack.c.l.bf16 %v1068_v43  ;;  %v1096_v49 = vunpack.c.h.bf16 %v1068_v43 }
 0x138   : > { %v1129_v50 = vadd.f32 %v2355_v44, %v1095_v48  ;;  %v1130_v51 = vadd.f32 %v2357_v45, %v1096_v49 }
 0x139   : > { %v883_v53 = vpop.f32.mrf.mxu2  ;;  %v932_v54 = vpop.f32.mrf.mxu3 }
 0x13a   : > { %v933_v56 = vadd.f32 %v932_v54, %v883_v53  ;;  %v1209_v58 = vmax.f32 %v1129_v50, 0.0  ;;  %v1210_v59 = vmax.f32 %v1130_v51, 0.0 }
 0x13c   : > { %v1069_v61 = vpack.c.bf16 %v1031_v55, %v933_v56  ;;  %v984_v62 = vpop.f32.mrf.mxu0  ;;  %v1033_v1 = vpop.f32.mrf.mxu1  ;;  %v1241_v6 = vpack.c.bf16 %v1210_v59, %v1209_v58 }
 0x13d   : > { %v1034_v15 = vadd.f32 %v1033_v1, %v984_v62 }
 0x13e   : > { %v1097_v3 = vunpack.c.l.bf16 %v1069_v61  ;;  %v1098_v4 = vunpack.c.h.bf16 %v1069_v61  ;;  %v1268_v17 = vunpack.c.l.bf16 %v1241_v6  ;;  %v1269_v23 = vunpack.c.h.bf16 %v1241_v6 }
 0x140   : > { %v1131_v8 = vadd.f32 %v2355_v44, %v1097_v3  ;;  %v1132_v9 = vadd.f32 %v2357_v45, %v1098_v4  ;;  %v1302_v28 = vmul.f32 %v2363_v18, %v1268_v17  ;;  %v1303_v35 = vmul.f32 %v2365_v24, %v1269_v23 }
 0x141   : > { %v886_v10 = vpop.f32.mrf.mxu2  ;;  %v935_v11 = vpop.f32.mrf.mxu3 }
 0x142   : > { %v1211_v13 = vmax.f32 %v1131_v8, 0.0  ;;  %v1212_v14 = vmax.f32 %v1132_v9, 0.0  ;;  %v936_v16 = vadd.f32 %v935_v11, %v886_v10 }
 0x144   : > { %v1242_v19 = vpack.c.bf16 %v1212_v14, %v1211_v13  ;;  %v1070_v20 = vpack.c.bf16 %v1034_v15, %v936_v16  ;;  %v986_v21 = vpop.f32.mrf.mxu0  ;;  %v1035_v22 = vpop.f32.mrf.mxu1 }
 0x145   : > { %v1036_v36 = vadd.f32 %v1035_v22, %v986_v21 }
 0x146   : > { %v1099_v25 = vunpack.c.l.bf16 %v1070_v20  ;;  %v1100_v5 = vunpack.c.h.bf16 %v1070_v20  ;;  %v1270_v26 = vunpack.c.l.bf16 %v1242_v19  ;;  %v1271_v27 = vunpack.c.h.bf16 %v1242_v19 }
 0x148   : > { %v1133_v29 = vadd.f32 %v2355_v44, %v1099_v25  ;;  %v1134_v30 = vadd.f32 %v2357_v45, %v1100_v5  ;;  %v1304_v31 = vmul.f32 %v2363_v18, %v1270_v26  ;;  %v1305_v32 = vmul.f32 %v2365_v24, %v1271_v27 }
 0x149   : > { %v888_v33 = vpop.f32.mrf.mxu2  ;;  %v937_v34 = vpop.f32.mrf.mxu3 }
 0x14a   : > { %v938_v37 = vadd.f32 %v937_v34, %v888_v33  ;;  %v1334_v38 = vpack.c.bf16 %v1304_v31, %v1302_v28  ;;  %v1213_v39 = vmax.f32 %v1133_v29, 0.0  ;;  %v1214_v63 = vmax.f32 %v1134_v30, 0.0 }
 0x14b   : > { %v1335_v40 = vpack.c.bf16 %v1305_v32, %v1303_v35 }
 0x14c   : > { %v1071_v41 = vpack.c.bf16 %v1036_v36, %v938_v37  ;;  %v989_v42 = vpop.f32.mrf.mxu0  ;;  %v1038_v0 = vpop.f32.mrf.mxu1  ;;  %v1350_v43 = vunpack.c.l.bf16 %v1334_v38  ;;  %v1243_v49 = vpack.c.bf16 %v1214_v63, %v1213_v39  ;;  %v1352_v59 = vunpack.c.h.bf16 %v1334_v38 }
 0x14d   : > { %v1351_v46 = vunpack.c.l.bf16 %v1335_v40  ;;  %v1039_v57 = vadd.f32 %v1038_v0, %v989_v42  ;;  %v1353_v60 = vunpack.c.h.bf16 %v1335_v40 }
 0x14e   : > { %v1101_v47 = vunpack.c.l.bf16 %v1071_v41  ;;  %v1102_v48 = vunpack.c.h.bf16 %v1071_v41  ;;  %v1272_v61 = vunpack.c.l.bf16 %v1243_v49  ;;  %v1273_v4 = vunpack.c.h.bf16 %v1243_v49 }
 0x14f   : > { %v1382_v50 = vadd.f32 %v1351_v46, %v1350_v43  ;;  %v1385_v10 = vadd.f32 %v1353_v60, %v1352_v59 }
 0x150   : > { %v1135_v51 = vadd.f32 %v2355_v44, %v1101_v47  ;;  %v1136_v52 = vadd.f32 %v2357_v45, %v1102_v48  ;;  %v1306_v11 = vmul.f32 %v2363_v18, %v1272_v61  ;;  %v1307_v19 = vmul.f32 %v2365_v24, %v1273_v4 }
 0x151   : > { %1383 = vadd.xlane.f32.xlu0 %v1382_v50  ;;  %v891_v53 = vpop.f32.mrf.mxu2  ;;  %v940_v54 = vpop.f32.mrf.mxu3 }
 0x152   : > { %v1215_v55 = vmax.f32 %v1135_v51, 0.0  ;;  %v1216_v56 = vmax.f32 %v1136_v52, 0.0  ;;  %v941_v58 = vadd.f32 %v940_v54, %v891_v53 }
 0x154   : > { %v1244_v62 = vpack.c.bf16 %v1216_v56, %v1215_v55  ;;  %v1072_v1 = vpack.c.bf16 %v1039_v57, %v941_v58  ;;  %v991_v2 = vpop.f32.mrf.mxu0  ;;  %v1040_v3 = vpop.f32.mrf.mxu1 }
 0x155   : > { %v1041_v20 = vadd.f32 %v1040_v3, %v991_v2 }
 0x156   : > { %v1103_v6 = vunpack.c.l.bf16 %v1072_v1  ;;  %v1104_v7 = vunpack.c.h.bf16 %v1072_v1  ;;  %v1274_v8 = vunpack.c.l.bf16 %v1244_v62  ;;  %v1275_v9 = vunpack.c.h.bf16 %v1244_v62 }
 0x158   : > { %v1137_v12 = vadd.f32 %v2355_v44, %v1103_v6  ;;  %v1138_v13 = vadd.f32 %v2357_v45, %v1104_v7  ;;  %v1308_v14 = vmul.f32 %v2363_v18, %v1274_v8  ;;  %v1309_v15 = vmul.f32 %v2365_v24, %v1275_v9 }
 0x159   : > { %1386 = vadd.xlane.f32.xlu0 %v1385_v10  ;;  %v893_v16 = vpop.f32.mrf.mxu2  ;;  %v942_v17 = vpop.f32.mrf.mxu3 }
 0x15a   : > { %v943_v21 = vadd.f32 %v942_v17, %v893_v16  ;;  %v1336_v22 = vpack.c.bf16 %v1308_v14, %v1306_v11  ;;  %v1217_v23 = vmax.f32 %v1137_v12, 0.0  ;;  %v1218_v25 = vmax.f32 %v1138_v13, 0.0 }
 0x15b   : > { %v1337_v5 = vpack.c.bf16 %v1309_v15, %v1307_v19 }
 0x15c   : > { %v1073_v26 = vpack.c.bf16 %v1041_v20, %v943_v21  ;;  %v994_v27 = vpop.f32.mrf.mxu0  ;;  %v1043_v28 = vpop.f32.mrf.mxu1  ;;  %v1354_v29 = vunpack.c.l.bf16 %v1336_v22  ;;  %v1245_v33 = vpack.c.bf16 %v1218_v25, %v1217_v23  ;;  %v1356_v42 = vunpack.c.h.bf16 %v1336_v22 }
 0x15d   : > { %v1355_v30 = vunpack.c.l.bf16 %v1337_v5  ;;  %v1044_v40 = vadd.f32 %v1043_v28, %v994_v27  ;;  %v1357_v0 = vunpack.c.h.bf16 %v1337_v5 }
 0x15e   : > { %v1105_v31 = vunpack.c.l.bf16 %v1073_v26  ;;  %v1106_v32 = vunpack.c.h.bf16 %v1073_v26  ;;  %v1276_v43 = vunpack.c.l.bf16 %v1245_v33  ;;  %v1277_v50 = vunpack.c.h.bf16 %v1245_v33 }
 0x15f   : > { %v1388_v34 = vadd.f32 %v1355_v30, %v1354_v29  ;;  %v1391_v55 = vadd.f32 %v1357_v0, %v1356_v42 }
 0x160   : > { %v1139_v35 = vadd.f32 %v2355_v44, %v1105_v31  ;;  %v1140_v36 = vadd.f32 %v2357_v45, %v1106_v32  ;;  %v1310_v56 = vmul.f32 %v2363_v18, %v1276_v43  ;;  %v1311_v1 = vmul.f32 %v2365_v24, %v1277_v50 }
 0x161   : > { %1389 = vadd.xlane.f32.xlu1 %v1388_v34  ;;  %v896_v37 = vpop.f32.mrf.mxu2  ;;  %v945_v38 = vpop.f32.mrf.mxu3 }
 0x162   : > { %v1219_v39 = vmax.f32 %v1139_v35, 0.0  ;;  %v1220_v63 = vmax.f32 %v1140_v36, 0.0  ;;  %v946_v41 = vadd.f32 %v945_v38, %v896_v37 }
 0x164   : > { %v1246_v46 = vpack.c.bf16 %v1220_v63, %v1219_v39  ;;  %v1074_v47 = vpack.c.bf16 %v1044_v40, %v946_v41  ;;  %v996_v48 = vpop.f32.mrf.mxu0  ;;  %v1045_v49 = vpop.f32.mrf.mxu1 }
 0x165   : > { %v1046_v2 = vadd.f32 %v1045_v49, %v996_v48 }
 0x166   : > { %v1107_v51 = vunpack.c.l.bf16 %v1074_v47  ;;  %v1108_v52 = vunpack.c.h.bf16 %v1074_v47  ;;  %v1278_v53 = vunpack.c.l.bf16 %v1246_v46  ;;  %v1279_v54 = vunpack.c.h.bf16 %v1246_v46 }
 0x168   : > { %v1141_v57 = vadd.f32 %v2355_v44, %v1107_v51  ;;  %v1142_v58 = vadd.f32 %v2357_v45, %v1108_v52  ;;  %v1312_v59 = vmul.f32 %v2363_v18, %v1278_v53  ;;  %v1313_v60 = vmul.f32 %v2365_v24, %v1279_v54 }
 0x169   : > { %1392 = vadd.xlane.f32.xlu1 %v1391_v55  ;;  %v898_v61 = vpop.f32.mrf.mxu2  ;;  %v947_v62 = vpop.f32.mrf.mxu3 }
 0x16a   : > { %v948_v3 = vadd.f32 %v947_v62, %v898_v61  ;;  %v1338_v4 = vpack.c.bf16 %v1312_v59, %v1310_v56  ;;  %v1221_v6 = vmax.f32 %v1141_v57, 0.0  ;;  %v1222_v7 = vmax.f32 %v1142_v58, 0.0 }
 0x16b   : > { %v1339_v8 = vpack.c.bf16 %v1313_v60, %v1311_v1 }
 0x16c   : > { %v1075_v9 = vpack.c.bf16 %v1046_v2, %v948_v3  ;;  %v999_v10 = vpop.f32.mrf.mxu0  ;;  %v1048_v11 = vpop.f32.mrf.mxu1  ;;  %v1358_v12 = vunpack.c.l.bf16 %v1338_v4  ;;  %v1247_v16 = vpack.c.bf16 %v1222_v7, %v1221_v6  ;;  %v1360_v27 = vunpack.c.h.bf16 %v1338_v4 }
 0x16d   : > { %v1359_v13 = vunpack.c.l.bf16 %v1339_v8  ;;  %v1049_v5 = vadd.f32 %v1048_v11, %v999_v10  ;;  %v1361_v28 = vunpack.c.h.bf16 %v1339_v8 }
 0x16e   : > { %v1109_v14 = vunpack.c.l.bf16 %v1075_v9  ;;  %v1110_v15 = vunpack.c.h.bf16 %v1075_v9  ;;  %v1280_v29 = vunpack.c.l.bf16 %v1247_v16  ;;  %v1281_v34 = vunpack.c.h.bf16 %v1247_v16 }
 0x16f   : > { %v1394_v17 = vadd.f32 %v1359_v13, %v1358_v12  ;;  %v1397_v39 = vadd.f32 %v1361_v28, %v1360_v27 }
 0x170   : > { %v1143_v19 = vadd.f32 %v2355_v44, %v1109_v14  ;;  %v1144_v20 = vadd.f32 %v2357_v45, %v1110_v15  ;;  %v1314_v63 = vmul.f32 %v2363_v18, %v1280_v29  ;;  %v1315_v47 = vmul.f32 %v2365_v24, %v1281_v34 }
 0x171   : > { %1395 = vadd.xlane.f32.xlu2 %v1394_v17  ;;  %v901_v21 = vpop.f32.mrf.mxu2  ;;  %v950_v22 = vpop.f32.mrf.mxu3 }
 0x172   : > { %v1223_v23 = vmax.f32 %v1143_v19, 0.0  ;;  %v1224_v25 = vmax.f32 %v1144_v20, 0.0  ;;  %v951_v26 = vadd.f32 %v950_v22, %v901_v21 }
 0x174   : > { %v1248_v30 = vpack.c.bf16 %v1224_v25, %v1223_v23  ;;  %v1076_v31 = vpack.c.bf16 %v1049_v5, %v951_v26  ;;  %v1001_v32 = vpop.f32.mrf.mxu0  ;;  %v1050_v33 = vpop.f32.mrf.mxu1 }
 0x175   : > { %v1051_v48 = vadd.f32 %v1050_v33, %v1001_v32 }
 0x176   : > { %v1111_v35 = vunpack.c.l.bf16 %v1076_v31  ;;  %v1112_v36 = vunpack.c.h.bf16 %v1076_v31  ;;  %v1282_v37 = vunpack.c.l.bf16 %v1248_v30  ;;  %v1283_v38 = vunpack.c.h.bf16 %v1248_v30 }
 0x178   : > { %v1145_v40 = vadd.f32 %v2355_v44, %v1111_v35  ;;  %v1146_v41 = vadd.f32 %v2357_v45, %v1112_v36  ;;  %v1316_v42 = vmul.f32 %v2363_v18, %v1282_v37  ;;  %v1317_v0 = vmul.f32 %v2365_v24, %v1283_v38 }
 0x179   : > { %1398 = vadd.xlane.f32.xlu2 %v1397_v39  ;;  %v903_v43 = vpop.f32.mrf.mxu2  ;;  %v952_v46 = vpop.f32.mrf.mxu3 }
 0x17a   : > { %v953_v49 = vadd.f32 %v952_v46, %v903_v43  ;;  %v1340_v50 = vpack.c.bf16 %v1316_v42, %v1314_v63  ;;  %v1225_v51 = vmax.f32 %v1145_v40, 0.0  ;;  %v1226_v52 = vmax.f32 %v1146_v41, 0.0 }
 0x17b   : > { %v1341_v53 = vpack.c.bf16 %v1317_v0, %v1315_v47 }
 0x17c   : > { %v1077_v54 = vpack.c.bf16 %v1051_v48, %v953_v49  ;;  %v1004_v55 = vpop.f32.mrf.mxu0  ;;  %v1053_v56 = vpop.f32.mrf.mxu1  ;;  %v1364_v57 = vunpack.c.h.bf16 %v1340_v50  ;;  %v1362_v58 = vunpack.c.l.bf16 %v1340_v50  ;;  %v1249_v1 = vpack.c.bf16 %v1226_v52, %v1225_v51 }
 0x17d   : > { %v1365_v59 = vunpack.c.h.bf16 %v1341_v53  ;;  %v1363_v60 = vunpack.c.l.bf16 %v1341_v53  ;;  %v1054_v11 = vadd.f32 %v1053_v56, %v1004_v55 }
 0x17e   : > { %v1113_v61 = vunpack.c.l.bf16 %v1077_v54  ;;  %v1114_v62 = vunpack.c.h.bf16 %v1077_v54  ;;  %v1284_v13 = vunpack.c.l.bf16 %v1249_v1  ;;  %v1285_v19 = vunpack.c.h.bf16 %v1249_v1 }
 0x17f   : > { %v1403_v2 = vadd.f32 %v1365_v59, %v1364_v57  ;;  %v1400_v3 = vadd.f32 %v1363_v60, %v1362_v58 }
 0x180   : > { %v1147_v4 = vadd.f32 %v2355_v44, %v1113_v61  ;;  %v1148_v6 = vadd.f32 %v2357_v45, %v1114_v62  ;;  %v1318_v25 = vmul.f32 %v2363_v18, %v1284_v13  ;;  %v1319_v31 = vmul.f32 %v2365_v24, %v1285_v19 }
 0x181   : > { %1404 = vadd.xlane.f32.xlu1 %v1403_v2  ;;  %1401 = vadd.xlane.f32.xlu0 %v1400_v3  ;;  %v906_v7 = vpop.f32.mrf.mxu2  ;;  %v955_v8 = vpop.f32.mrf.mxu3 }
 0x182   : > { %v1227_v9 = vmax.f32 %v1147_v4, 0.0  ;;  %v1228_v10 = vmax.f32 %v1148_v6, 0.0  ;;  %v956_v12 = vadd.f32 %v955_v8, %v906_v7 }
 0x184   : > { %v1250_v14 = vpack.c.bf16 %v1228_v10, %v1227_v9  ;;  %v1078_v15 = vpack.c.bf16 %v1054_v11, %v956_v12  ;;  %v1006_v16 = vpop.f32.mrf.mxu0  ;;  %v1055_v17 = vpop.f32.mrf.mxu1 }
 0x185   : > { %v1056_v32 = vadd.f32 %v1055_v17, %v1006_v16 }
 0x186   : > { %v1115_v20 = vunpack.c.l.bf16 %v1078_v15  ;;  %v1116_v21 = vunpack.c.h.bf16 %v1078_v15  ;;  %v1286_v22 = vunpack.c.l.bf16 %v1250_v14  ;;  %v1287_v23 = vunpack.c.h.bf16 %v1250_v14 }
 0x188   : > { %v1149_v5 = vadd.f32 %v2355_v44, %v1115_v20  ;;  %v1150_v26 = vadd.f32 %v2357_v45, %v1116_v21  ;;  %v1320_v27 = vmul.f32 %v2363_v18, %v1286_v22  ;;  %v1321_v28 = vmul.f32 %v2365_v24, %v1287_v23 }
 0x189   : > { %v908_v29 = vpop.f32.mrf.mxu2  ;;  %v957_v30 = vpop.f32.mrf.mxu3 }
 0x18a   : > { %v958_v33 = vadd.f32 %v957_v30, %v908_v29  ;;  %v1342_v34 = vpack.c.bf16 %v1320_v27, %v1318_v25  ;;  %v1229_v35 = vmax.f32 %v1149_v5, 0.0  ;;  %v1230_v36 = vmax.f32 %v1150_v26, 0.0 }
 0x18b   : > { %v1343_v37 = vpack.c.bf16 %v1321_v28, %v1319_v31 }
 0x18c   : > { %v1079_v38 = vpack.c.bf16 %v1056_v32, %v958_v33  ;;  %v1009_v39 = vpop.f32.mrf.mxu0  ;;  %v1058_v63 = vpop.f32.mrf.mxu1  ;;  %v1368_v40 = vunpack.c.h.bf16 %v1342_v34  ;;  %v1366_v41 = vunpack.c.l.bf16 %v1342_v34  ;;  %v1251_v47 = vpack.c.bf16 %v1230_v36, %v1229_v35 }
 0x18d   : > { %v1369_v42 = vunpack.c.h.bf16 %v1343_v37  ;;  %v1367_v0 = vunpack.c.l.bf16 %v1343_v37  ;;  %v1059_v56 = vadd.f32 %v1058_v63, %v1009_v39 }
 0x18e   : > { %v1117_v43 = vunpack.c.l.bf16 %v1079_v38  ;;  %v1118_v46 = vunpack.c.h.bf16 %v1079_v38  ;;  %v1288_v58 = vunpack.c.l.bf16 %v1251_v47  ;;  %v1289_v1 = vunpack.c.h.bf16 %v1251_v47 }
 0x18f   : > { %v1409_v48 = vadd.f32 %v1369_v42, %v1368_v40  ;;  %v1406_v49 = vadd.f32 %v1367_v0, %v1366_v41 }
 0x190   : > { %v1151_v50 = vadd.f32 %v2355_v44, %v1117_v43  ;;  %v1152_v51 = vadd.f32 %v2357_v45, %v1118_v46  ;;  %v1322_v7 = vmul.f32 %v2363_v18, %v1288_v58  ;;  %v1323_v14 = vmul.f32 %v2365_v24, %v1289_v1 }
 0x191   : > { %1410 = vadd.xlane.f32.xlu0 %v1409_v48  ;;  %1407 = vadd.xlane.f32.xlu2 %v1406_v49  ;;  %v911_v52 = vpop.f32.mrf.mxu2  ;;  %v960_v53 = vpop.f32.mrf.mxu3 }
 0x192   : > { %v1231_v54 = vmax.f32 %v1151_v50, 0.0  ;;  %v1232_v55 = vmax.f32 %v1152_v51, 0.0  ;;  %v961_v57 = vadd.f32 %v960_v53, %v911_v52 }
 0x194   : > { %v1252_v59 = vpack.c.bf16 %v1232_v55, %v1231_v54  ;;  %v1080_v60 = vpack.c.bf16 %v1059_v56, %v961_v57  ;;  %v1011_v61 = vpop.f32.mrf.mxu0  ;;  %v1060_v62 = vpop.f32.mrf.mxu1 }
 0x195   : > { %v1061_v15 = vadd.f32 %v1060_v62, %v1011_v61 }
 0x196   : > { %v1119_v2 = vunpack.c.l.bf16 %v1080_v60  ;;  %v1120_v3 = vunpack.c.h.bf16 %v1080_v60  ;;  %v1290_v4 = vunpack.c.l.bf16 %v1252_v59  ;;  %v1291_v6 = vunpack.c.h.bf16 %v1252_v59 }
 0x198   : > { %v1153_v8 = vadd.f32 %v2355_v44, %v1119_v2  ;;  %v1154_v9 = vadd.f32 %v2357_v45, %v1120_v3  ;;  %v1324_v10 = vmul.f32 %v2363_v18, %v1290_v4  ;;  %v1325_v11 = vmul.f32 %v2365_v24, %v1291_v6 }
 0x199   : > { %v913_v12 = vpop.f32.mrf.mxu2  ;;  %v962_v13 = vpop.f32.mrf.mxu3 }
 0x19a   : > { %v963_v16 = vadd.f32 %v962_v13, %v913_v12  ;;  %v1344_v17 = vpack.c.bf16 %v1324_v10, %v1322_v7  ;;  %v1233_v19 = vmax.f32 %v1153_v8, 0.0  ;;  %v1234_v20 = vmax.f32 %v1154_v9, 0.0 }
 0x19b   : > { %v1345_v21 = vpack.c.bf16 %v1325_v11, %v1323_v14 }
 0x19c   : > { %v1081_v22 = vpack.c.bf16 %v1061_v15, %v963_v16  ;;  %v1372_v23 = vunpack.c.h.bf16 %v1344_v17  ;;  %v1370_v25 = vunpack.c.l.bf16 %v1344_v17  ;;  %v1014_v5 = vpop.f32.mrf.mxu0  ;;  %v1063_v26 = vpop.f32.mrf.mxu1  ;;  %v1253_v31 = vpack.c.bf16 %v1234_v20, %v1233_v19 }
 0x19d   : > { %v1373_v27 = vunpack.c.h.bf16 %v1345_v21  ;;  %v1371_v28 = vunpack.c.l.bf16 %v1345_v21  ;;  %v1064_v63 = vadd.f32 %v1063_v26, %v1014_v5 }
 0x19e   : > { %v1121_v29 = vunpack.c.l.bf16 %v1081_v22  ;;  %v1122_v30 = vunpack.c.h.bf16 %v1081_v22  ;;  %v1292_v41 = vunpack.c.l.bf16 %v1253_v31  ;;  %v1293_v43 = vunpack.c.h.bf16 %v1253_v31 }
 0x19f   : > { %v1415_v32 = vadd.f32 %v1373_v27, %v1372_v23  ;;  %v1412_v33 = vadd.f32 %v1371_v28, %v1370_v25 }
 0x1a0   : > { %v1155_v34 = vadd.f32 %v2355_v44, %v1121_v29  ;;  %v1156_v35 = vadd.f32 %v2357_v45, %v1122_v30  ;;  %v1326_v52 = vmul.f32 %v2363_v18, %v1292_v41  ;;  %v1327_v59 = vmul.f32 %v2365_v24, %v1293_v43 }
 0x1a1   : > { %1416 = vadd.xlane.f32.xlu2 %v1415_v32  ;;  %1413 = vadd.xlane.f32.xlu1 %v1412_v33  ;;  %v916_v36 = vpop.f32.mrf.mxu2  ;;  %v965_v37 = vpop.f32.mrf.mxu3  ;;  %v2429_v41 = vstv %s1430_s16 }
 0x1a2   : > { %v1235_v38 = vmax.f32 %v1155_v34, 0.0  ;;  %v1236_v39 = vmax.f32 %v1156_v35, 0.0  ;;  %v966_v40 = vadd.f32 %v965_v37, %v916_v36 }
 0x1a4   : > { %v1254_v42 = vpack.c.bf16 %v1236_v39, %v1235_v38  ;;  %v1082_v0 = vpack.c.bf16 %v1064_v63, %v966_v40  ;;  %v1016_v50 = vpop.f32.mrf.mxu0  ;;  %v1065_v51 = vpop.f32.mrf.mxu1  ;;  %v1464_v63 = vlaneseq }
 0x1a5   : > { %v1066_v60 = vadd.f32 %v1065_v51, %v1016_v50 }
 0x1a6   : > { %v1123_v46 = vunpack.c.l.bf16 %v1082_v0  ;;  %v1124_v47 = vunpack.c.h.bf16 %v1082_v0  ;;  %v1294_v48 = vunpack.c.l.bf16 %v1254_v42  ;;  %v1295_v49 = vunpack.c.h.bf16 %v1254_v42 }
 0x1a7   : > { %v2427_v40 = vand.u32 127, %v1464_v63 }
 0x1a8   : > { %v1157_v53 = vadd.f32 %v2355_v44, %v1123_v46  ;;  %v1158_v54 = vadd.f32 %v2357_v45, %v1124_v47  ;;  %v1328_v55 = vmul.f32 %v2363_v18, %v1294_v48  ;;  %v1329_v56 = vmul.f32 %v2365_v24, %v1295_v49 }
 0x1a9   : > { %v918_v57 = vpop.f32.mrf.mxu2  ;;  %v967_v58 = vpop.f32.mrf.mxu3  ;;  %v1467_v42 = vadd.s32 4294967288, %v2427_v40  ;;  %v1471_v43 = vadd.s32 4294967280, %v2427_v40  ;;  %v1475_v49 = vadd.s32 4294967272, %v2427_v40  ;;  %v1479_v51 = vadd.s32 4294967264, %v2427_v40 }
 0x1aa   : > { %v968_v61 = vadd.f32 %v967_v58, %v918_v57  ;;  %v1346_v62 = vpack.c.bf16 %v1328_v55, %v1326_v52  ;;  %v1237_v1 = vmax.f32 %v1157_v53, 0.0  ;;  %v1347_v2 = vpack.c.bf16 %v1329_v56, %v1327_v59 }
 0x1ab   : > { %v1238_v3 = vmax.f32 %v1158_v54, 0.0  ;;  %v1483_v54 = vadd.s32 4294967256, %v2427_v40  ;;  %v1487_v57 = vadd.s32 4294967248, %v2427_v40 }
 0x1ac   : > { %v1083_v4 = vpack.c.bf16 %v1066_v60, %v968_v61  ;;  %v1376_v6 = vunpack.c.h.bf16 %v1346_v62  ;;  %v1374_v7 = vunpack.c.l.bf16 %v1346_v62  ;;  %v1377_v8 = vunpack.c.h.bf16 %v1347_v2 }
 0x1ad   : > { %v1375_v9 = vunpack.c.l.bf16 %v1347_v2  ;;  %v1255_v14 = vpack.c.bf16 %v1238_v3, %v1237_v1 }
 0x1ae   : > { %v1125_v10 = vunpack.c.l.bf16 %v1083_v4  ;;  %v1126_v11 = vunpack.c.h.bf16 %v1083_v4  ;;  %v1421_v12 = vadd.f32 %v1377_v8, %v1376_v6  ;;  %v1491_v4 = vadd.s32 4294967240, %v2427_v40 }
 0x1af   : > { %v1418_v13 = vadd.f32 %v1375_v9, %v1374_v7  ;;  %v1296_v21 = vunpack.c.l.bf16 %v1255_v14  ;;  %v1297_v22 = vunpack.c.h.bf16 %v1255_v14  ;;  %v1495_v9 = vadd.s32 4294967232, %v2427_v40 }
 0x1b0   : > { %v1159_v15 = vadd.f32 %v2355_v44, %v1125_v10  ;;  %v1160_v16 = vadd.f32 %v2357_v45, %v1126_v11  ;;  %1422 = vadd.xlane.f32.xlu1 %v1421_v12  ;;  %v1499_v14 = vadd.s32 4294967224, %v2427_v40 }
 0x1b1   : > { %1419 = vadd.xlane.f32.xlu0 %v1418_v13  ;;  %v1330_v5 = vmul.f32 %v2363_v18, %v1296_v21  ;;  %v1331_v26 = vmul.f32 %v2365_v24, %v1297_v22  ;;  %v1503_v22 = vadd.s32 4294967216, %v2427_v40 }
 0x1b2   : > { %v1239_v17 = vmax.f32 %v1159_v15, 0.0  ;;  %v1240_v19 = vmax.f32 %v1160_v16, 0.0 }
 0x1b4   : > { %v1256_v20 = vpack.c.bf16 %v1240_v19, %v1239_v17 }
 0x1b6   : > { %v1298_v23 = vunpack.c.l.bf16 %v1256_v20  ;;  %v1299_v25 = vunpack.c.h.bf16 %v1256_v20 }
 0x1b8   : > { %v1332_v27 = vmul.f32 %v2363_v18, %v1298_v23  ;;  %v1333_v28 = vmul.f32 %v2365_v24, %v1299_v25 }
 0x1ba   : > { %v1348_v44 = vpack.c.bf16 %v1332_v27, %v1330_v5  ;;  %v1349_v29 = vpack.c.bf16 %v1333_v28, %v1331_v26  ;;  %v1507_v5 = vadd.s32 4294967208, %v2427_v40 }
 0x1bc   : > { %v1380_v45 = vunpack.c.h.bf16 %v1348_v44  ;;  %v1381_v30 = vunpack.c.h.bf16 %v1349_v29  ;;  %v1378_v31 = vunpack.c.l.bf16 %v1348_v44  ;;  %v1379_v32 = vunpack.c.l.bf16 %v1349_v29 }
 0x1be   : > { %v1427_v33 = vadd.f32 %v1381_v30, %v1380_v45  ;;  %v1424_v34 = vadd.f32 %v1379_v32, %v1378_v31  ;;  %v1511_v30 = vadd.s32 4294967200, %v2427_v40 }
 0x1c0   : > { %1428 = vadd.xlane.f32.xlu0 %v1427_v33  ;;  %1425 = vadd.xlane.f32.xlu2 %v1424_v34  ;;  %v1515_v34 = vadd.s32 4294967192, %v2427_v40 }
 0x1c4   : > { %v1384_v35 = vpop.xlane.xlu0 %1383 }
 0x1c5   : > { %v1432_v48 = vadd.f32 %v2429_v41, %v1384_v35 }
 0x1c7   : > { %v1466_v60 = vperm.slane %v1432_v48, %v2427_v40 }
 0x1cc   : > { %v1387_v38 = vpop.xlane.xlu0 %1386 }
 0x1cd   : > { %v1433_v0 = vadd.f32 %v2429_v41, %v1387_v38  ;;  %v1523_v38 = vadd.s32 4294967176, %v2427_v40 }
 0x1cf   : > { %v1468_v53 = vperm.slane %v1433_v0, %v1467_v42 }
 0x1d1   : > { %v1470_v2 = vsel %vm1469_vm1, %v1468_v53, %v1466_v60 }
 0x1d4   : > { %v1390_v36 = vpop.xlane.xlu1 %1389 }
 0x1d5   : > { %v1434_v46 = vadd.f32 %v2429_v41, %v1390_v36 }
 0x1d7   : > { %v1472_v56 = vperm.slane %v1434_v46, %v1471_v43 }
 0x1d9   : > { %v1474_v7 = vsel %vm1473_vm2, %v1472_v56, %v1470_v2 }
 0x1dc   : > { %v1393_v39 = vpop.xlane.xlu1 %1392 }
 0x1dd   : > { %v1435_v50 = vadd.f32 %v2429_v41, %v1393_v39  ;;  %v1519_v39 = vadd.s32 4294967184, %v2427_v40 }
 0x1df   : > { %v1476_v61 = vperm.slane %v1435_v50, %v1475_v49 }
 0x1e1   : > { %v1478_v12 = vsel %vm1477_vm3, %v1476_v61, %v1474_v7 }
 0x1e4   : > { %v1396_v37 = vpop.xlane.xlu2 %1395 }
 0x1e5   : > { %v1436_v52 = vadd.f32 %v2429_v41, %v1396_v37 }
 0x1e7   : > { %v1480_v1 = vperm.slane %v1436_v52, %v1479_v51 }
 0x1e9   : > { %v1482_v13 = vsel %vm1481_vm4, %v1480_v1, %v1478_v12 }
 0x1ec   : > { %v1399_v18 = vpop.xlane.xlu2 %1398 }
 0x1ed   : > { %v1437_v55 = vadd.f32 %v2429_v41, %v1399_v18 }
 0x1ef   : > { %v1484_v3 = vperm.slane %v1437_v55, %v1483_v54 }
 0x1f1   : > { %v1486_v15 = vsel %vm1485_vm5, %v1484_v3, %v1482_v13 }
 0x1f4   : > { %v1402_v24 = vpop.xlane.xlu0 %1401  ;;  %v1405_v47 = vpop.xlane.xlu1 %1404 }
 0x1f5   : > { %v1438_v58 = vadd.f32 %v2429_v41, %v1402_v24  ;;  %v1439_v6 = vadd.f32 %v2429_v41, %v1405_v47 }
 0x1f7   : > { %v1488_v8 = vperm.slane %v1438_v58, %v1487_v57  ;;  %v1492_v16 = vperm.slane %v1439_v6, %v1491_v4 }
 0x1f9   : > { %v1490_v19 = vsel %vm1489_vm6, %v1488_v8, %v1486_v15 }
 0x1fa   : > { %v1494_v27 = vsel %vm1493_vm7, %v1492_v16, %v1490_v19 }
 0x204   : > { %v1408_v59 = vpop.xlane.xlu2 %1407  ;;  %v1411_v62 = vpop.xlane.xlu0 %1410 }
 0x205   : > { %v1440_v10 = vadd.f32 %v2429_v41, %v1408_v59  ;;  %v1441_v17 = vadd.f32 %v2429_v41, %v1411_v62 }
 0x207   : > { %v1496_v20 = vperm.slane %v1440_v10, %v1495_v9  ;;  %v1500_v26 = vperm.slane %v1441_v17, %v1499_v14 }
 0x209   : > { %v1498_v44 = vsel %vm1497_vm8, %v1496_v20, %v1494_v27 }
 0x20a   : > { %v1502_v33 = vsel %vm1501_vm9, %v1500_v26, %v1498_v44 }
 0x214   : > { %v1414_v11 = vpop.xlane.xlu1 %1413  ;;  %v1417_v21 = vpop.xlane.xlu2 %1416 }
 0x215   : > { %v1442_v23 = vadd.f32 %v2429_v41, %v1414_v11  ;;  %v1443_v28 = vadd.f32 %v2429_v41, %v1417_v21 }
 0x217   : > { %v1504_v29 = vperm.slane %v1442_v23, %v1503_v22  ;;  %v1508_v32 = vperm.slane %v1443_v28, %v1507_v5 }
 0x219   : > { %v1506_v36 = vsel %vm1505_vm10, %v1504_v29, %v1502_v33 }
 0x21a   : > { %v1510_v18 = vsel %vm1509_vm11, %v1508_v32, %v1506_v36 }
 0x223   : > { %v1423_v45 = vpop.xlane.xlu1 %1422 }
 0x224   : > { %v1420_v25 = vpop.xlane.xlu0 %1419  ;;  %v1445_v35 = vadd.f32 %v2429_v41, %v1423_v45 }
 0x225   : > { %v1444_v31 = vadd.f32 %v2429_v41, %v1420_v25 }
 0x226   : > { %v1516_v63 = vperm.slane %v1445_v35, %v1515_v34 }
 0x227   : > { %v1512_v37 = vperm.slane %v1444_v31, %v1511_v30 }
 0x229   : > { %v1514_v0 = vsel %vm1513_vm12, %v1512_v37, %v1510_v18 }
 0x22a   : > { %v1518_v48 = vsel %vm1517_vm13, %v1516_v63, %v1514_v0 }
 0x233   : > { %v1429_v24 = vpop.xlane.xlu0 %1428  ;;  %v1426_v42 = vpop.xlane.xlu2 %1425 }
 0x234   : > { %v1447_v43 = vadd.f32 %v2429_v41, %v1429_v24  ;;  %v1446_v46 = vadd.f32 %v2429_v41, %v1426_v42 }
 0x236   : > { %v1524_v40 = vperm.slane %v1447_v43, %v1523_v38  ;;  %v1520_v47 = vperm.slane %v1446_v46, %v1519_v39 }
 0x238   : > { %v1522_v49 = vsel %vm1521_vm14, %v1520_v47, %v1518_v48 }
 0x239   : > { %v1526_v50 = vsel %vm1525_vm15, %v1524_v40, %v1522_v49 }
 0x23a   : > { %1528 = vst [vmem:[%s287_s21] sm:$0x1] %v1526_v50 }
 0x23b   : > { %1920 = shalt.err (!%p1917_p8)
}
 0x23c   : > { %1817 = dma.vmem_to_hbm [thread:$0]  (%p2043_p5), %s1541_s22, 16, %s1543_s24, %s1530_s6  }
 0x23d PF: > { %p1829_p9 = scmp.ge.s32.totalorder %s1959_s29, 2  ;;  %s1554_s16 = sand.u32 1, %s1947_s26  }
 0x23e   : > { %s1555_s17 = scalar_lea.sflag [#allocation5], %s1554_s16 }
 0x23f   : > { %p1824_p10 = pnand %p1829_p9, %p2047_p6 }
 0x241   : > { %p1825_p11 = pneg %p1824_p10 }
 0x243   : > { %1942 = dma.done.wait (%p1825_p11), %s1555_s17, 16  }
 0x244   : > { %1944 = vsyncadd (%p1825_p11), %s1555_s17, 4294967280  ;;  %p19_p12 = scmp.ge.s32.totalorder %s2030_s8, 4   ;;  %s2505_s26 = smov %s1951_s27 }
 0x245   : > { %s2506_s27 = smov %s1955_s28  ;;  %s2507_s28 = smov %s2041_s11 }
 0x246   : > { %s2508_s29 = smov %s2030_s8  ;;  %21 = sbr.rel (!%p19_p12) target bundleno = 6 (0x6), region = 88 }
 0x24b   :  { %1560 = vsyncpa [#allocation4], 1 }
 0x24c   :  { %1562 = vsyncpa [#allocation4 + $0x1], 1 }
 0x24d   :  { %1563 = vsyncpa [#allocation5], 1 }
 0x24e   :  { %1565 = vsyncpa [#allocation5 + $0x1], 1 }

</bundles_post_ra>
